<compile_context>
chip_gen: v6e
topology: v6e:2x2x1
jax: 0.10.0
libtpu: 0.0.40
codegen_flags: <defaults>
</compile_context>

<pallas_src>
import functools

import jax
import jax.numpy as jnp
from jax.experimental import pallas as pl
from jax.experimental.pallas import tpu as pltpu

BN_EPS = 1e-5
S_TRUE = 361   # 19x19 board -> 361 positions (fixed by Linear(361*Cout, 256))
S_PAD = 384    # 361 padded to a multiple of 128 for the hidden-matmul K dim


# --------------------------------------------------------------------------- #
# Kernel 1: per-batch-tile BN partial statistics (sum / sum-of-squares of the
# un-biased 1x1-conv output).  Accumulator outputs, "arbitrary" grid axis.
# --------------------------------------------------------------------------- #
def _stats_kernel(x_ref, wc_ref, sum_ref, ssq_ref, *, cin, cout):
    """x:[BT, Cin, 361] (VMEM)  wc:[Cout, Cin] (SMEM)
       sum/ssq:[Cout, 361] accumulated across the batch grid."""
    @pl.when(pl.program_id(0) == 0)
    def _init():
        sum_ref[...] = jnp.zeros_like(sum_ref)
        ssq_ref[...] = jnp.zeros_like(ssq_ref)

    for co in range(cout):
        # 1x1 conv for channel co: VPU broadcast-FMAs over Cin (bias omitted —
        # a bias before training-mode BN cancels exactly).
        acc = wc_ref[co, 0] * x_ref[:, 0, :]
        for ci in range(1, cin):
            acc = acc + wc_ref[co, ci] * x_ref[:, ci, :]
        # Reduce over the batch-tile (sublane) axis only; the lane reduction
        # over the 361 spatial positions is deferred to the tiny XLA finalize.
        sum_ref[co:co + 1, :] += jnp.sum(acc, axis=0, keepdims=True)
        ssq_ref[co:co + 1, :] += jnp.sum(acc * acc, axis=0, keepdims=True)


# --------------------------------------------------------------------------- #
# Kernel 2: per-batch-tile apply pass.  BN scale is pre-folded into the conv
# weights (wcs = wc * scale) and the BN shift into one scalar per channel, so
# this kernel is: scaled-conv + shift + ReLU -> one hidden matmul -> head.
# --------------------------------------------------------------------------- #
def _apply_kernel(x_ref, wcs_ref, shift_ref, w1p_ref, b1_ref, w2t_ref, b2_ref,
                  o_ref, ya_scr, *, cin, cout, s_true, s_pad):
    """x:[BT, Cin, 361]  wcs:[Cout, Cin] (SMEM)  shift:[Cout, 1] (SMEM)
       w1p:[Cout*384, 256]  b1:[1, 256]  w2t:[256, K]  b2:[1, K]
       o:[BT, K]  ya_scr:[BT, Cout*384] f32 VMEM scratch."""
    bt = x_ref.shape[0]

    # Zero the spatial padding columns of the flattened activation so they
    # stay inert against the (zero-rowed) padded hidden weight.
    for co in range(cout):
        ya_scr[:, co * s_pad + s_true:(co + 1) * s_pad] = jnp.zeros(
            (bt, s_pad - s_true), jnp.float32)

    # Scaled 1x1 conv + BN shift + ReLU, written channel-major into the
    # flattened [BT, Cout*384] layout the hidden matmul consumes directly.
    for co in range(cout):
        acc = wcs_ref[co, 0] * x_ref[:, 0, :]
        for ci in range(1, cin):
            acc = acc + wcs_ref[co, ci] * x_ref[:, ci, :]
        ya_scr[:, co * s_pad:co * s_pad + s_true] = jnp.maximum(
            acc + shift_ref[co, 0], 0.0)

    # Hidden Linear: ONE MXU matmul, M = batch tile, K = Cout*384, N = 256.
    h = jnp.dot(ya_scr[...], w1p_ref[...], preferred_element_type=jnp.float32)
    h = jnp.maximum(h + b1_ref[...], 0.0)

    # Output head + tanh: one batched dot, one store.
    out = jnp.dot(h, w2t_ref[...], preferred_element_type=jnp.float32) + b2_ref[...]
    o_ref[...] = jnp.tanh(out)


# --------------------------------------------------------------------------- #
# Parameter construction / one-time layout prep
# --------------------------------------------------------------------------- #
def init_params(key, cin, cout, komi, S=S_TRUE, H1=256):
    ks = jax.random.split(key, 6)
    return dict(
        conv_w=jax.random.normal(ks[0], (cout, cin), jnp.float32) / jnp.sqrt(cin),
        conv_b=jax.random.normal(ks[1], (cout,), jnp.float32) * 0.1,
        gamma=jnp.ones((cout,), jnp.float32),
        beta=jnp.zeros((cout,), jnp.float32),
        hidden_w=jax.random.normal(ks[2], (H1, cout * S), jnp.float32)
        / jnp.sqrt(cout * S),
        hidden_b=jax.random.normal(ks[3], (H1,), jnp.float32) * 0.1,
        scale_w=jax.random.normal(ks[4], (komi, H1), jnp.float32) / jnp.sqrt(H1),
        scale_b=jax.random.normal(ks[5], (komi,), jnp.float32) * 0.1,
    )


def prepare_params(p):
    """One-time conversion into kernel layout (hidden weight is reshaped,
    spatially zero-padded to 384 and transposed once, not per forward call).
    The conv bias is intentionally dropped: it cancels under training-mode BN."""
    cout, cin = p["conv_w"].shape
    h1 = p["hidden_w"].shape[0]
    k = p["scale_w"].shape[0]
    w1 = p["hidden_w"].reshape(h1, cout, S_TRUE)                    # [H1,Cout,S]
    w1 = jnp.pad(w1, ((0, 0), (0, 0), (0, S_PAD - S_TRUE)))         # zero pad S
    w1p = jnp.transpose(w1, (1, 2, 0)).reshape(cout * S_PAD, h1)    # [Cout*384,H1]
    return dict(
        wc=p["conv_w"].astype(jnp.float32),                         # [Cout, Cin]
        gamma=p["gamma"].astype(jnp.float32),                       # [Cout]
        beta=p["beta"].astype(jnp.float32),                         # [Cout]
        w1p=w1p.astype(jnp.float32),
        b1=p["hidden_b"].reshape(1, h1).astype(jnp.float32),
        w2t=p["scale_w"].T.astype(jnp.float32),                     # [H1, K]
        b2=p["scale_b"].reshape(1, k).astype(jnp.float32),
    )


def _pick_batch_tile(b, cin, budget_bytes=24 << 20):
    """Batch tile sized against a conservative VMEM budget (double-buffered x
    tile), capped at 256 rows for the MXU and shrunk to a divisor of B."""
    per_sample = cin * S_PAD * 4 * 2
    bt = int(max(1, min(b, 256, budget_bytes // max(per_sample, 1))))
    while b % bt:
        bt -= 1
    return bt


# --------------------------------------------------------------------------- #
# Forward
# --------------------------------------------------------------------------- #
@jax.jit
def value_forward(x_nchw, kp):
    B, Cin, H, W = x_nchw.shape
    S = H * W
    assert S == S_TRUE, "module is hard-wired to a 19x19 board (361 positions)"
    Cout = kp["wc"].shape[0]
    H1 = kp["b1"].shape[1]
    K = kp["w2t"].shape[1]

    # Zero-copy glue: NCHW -> [B, Cin, 361]; no pad, no transpose, no mask.
    x3 = x_nchw.reshape(B, Cin, S).astype(jnp.float32)

    BT = _pick_batch_tile(B, Cin)
    grid = (B // BT,)
    x_spec = pl.BlockSpec((BT, Cin, S_TRUE), lambda i: (i, 0, 0))
    smem = pl.BlockSpec(memory_space=pltpu.MemorySpace.SMEM)

    # ---- pass 1: BN partial statistics (accumulated over the batch grid) ----
    stat_spec = pl.BlockSpec((Cout, S_TRUE), lambda i: (0, 0))
    psum, pssq = pl.pallas_call(
        functools.partial(_stats_kernel, cin=Cin, cout=Cout),
        grid=grid,
        in_specs=[x_spec, smem],
        out_specs=(stat_spec, stat_spec),
        out_shape=(jax.ShapeDtypeStruct((Cout, S_TRUE), jnp.float32),
                   jax.ShapeDtypeStruct((Cout, S_TRUE), jnp.float32)),
        compiler_params=pltpu.CompilerParams(
            dimension_semantics=("arbitrary",)),
    )(x3, kp["wc"])

    # ---- finalize (tiny, [Cout]-sized XLA math between the two kernels) ----
    n = float(B * S_TRUE)                       # biased variance, as in BN train
    mean0 = jnp.sum(psum, axis=1) / n
    var = jnp.maximum(jnp.sum(pssq, axis=1) / n - mean0 * mean0, 0.0)
    scale = kp["gamma"] * jax.lax.rsqrt(var + BN_EPS)
    wcs = kp["wc"] * scale[:, None]             # BN scale folded into conv w
    shift2 = (kp["beta"] - mean0 * scale).reshape(Cout, 1)

    # ---- pass 2: apply + hidden + head, batch-parallel over the grid ----
    return pl.pallas_call(
        functools.partial(_apply_kernel, cin=Cin, cout=Cout,
                          s_true=S_TRUE, s_pad=S_PAD),
        grid=grid,
        in_specs=[x_spec, smem, smem,
                  pl.BlockSpec((Cout * S_PAD, H1), lambda i: (0, 0)),
                  pl.BlockSpec((1, H1), lambda i: (0, 0)),
                  pl.BlockSpec((H1, K), lambda i: (0, 0)),
                  pl.BlockSpec((1, K), lambda i: (0, 0))],
        out_specs=pl.BlockSpec((BT, K), lambda i: (i, 0)),
        out_shape=jax.ShapeDtypeStruct((B, K), jnp.float32),
        scratch_shapes=[pltpu.VMEM((BT, Cout * S_PAD), jnp.float32)],
        compiler_params=pltpu.CompilerParams(
            dimension_semantics=("parallel",)),
    )(x3, wcs, shift2, kp["w1p"], kp["b1"], kp["w2t"], kp["b2"])


# --------------------------------------------------------------------------- #
# Pure-JAX reference (mirrors the PyTorch forward, training-mode BN)
# --------------------------------------------------------------------------- #
def value_ref(x, p):
    y = jnp.einsum("oc,bchw->bohw", p["conv_w"], x) + p["conv_b"][None, :, None, None]
    mean = y.mean(axis=(0, 2, 3), keepdims=True)
    var = ((y - mean) ** 2).mean(axis=(0, 2, 3), keepdims=True)
    y = (y - mean) * jax.lax.rsqrt(var + BN_EPS)
    y = y * p["gamma"][None, :, None, None] + p["beta"][None, :, None, None]
    y = jnp.maximum(y, 0.0)
    flat = y.reshape(y.shape[0], -1)
    h = jnp.maximum(flat @ p["hidden_w"].T + p["hidden_b"], 0.0)
    return jnp.tanh(h @ p["scale_w"].T + p["scale_b"])


if __name__ == "__main__":
    B, Cin, Cout, K = 2, 4, 2, 1
    H = W = 19                      # 19x19 board => 361 features per channel

    key = jax.random.PRNGKey(0)
    kx, kparam = jax.random.split(key)
    x = jax.random.normal(kx, (B, Cin, H, W), dtype=jnp.float32)
    params = init_params(kparam, Cin, Cout, K)

    kernel_params = prepare_params(params)      # hoisted one-time layout prep

    out = jax.block_until_ready(value_forward(x, kernel_params))
    ref = value_ref(x, params)

    assert out.shape == (B, K), out.shape
    assert jnp.allclose(out, ref, atol=1e-3, rtol=1e-3), (out, ref)
    print("KERNEL_OK")
</pallas_src>

<mosaic_0001>
module attributes {stable_mosaic.version = 11 : i64} {
  func.func @_stats_kernel(%arg0: i32, %arg1: memref<2x4x361xf32, #tpu.memory_space<vmem>>, %arg2: memref<2x4xf32, #tpu.memory_space<smem>>, %arg3: memref<2x361xf32, #tpu.memory_space<vmem>>, %arg4: memref<2x361xf32, #tpu.memory_space<vmem>>) attributes {dimension_semantics = [#tpu.dimension_semantics<arbitrary>], iteration_bounds = array<i64: 1>, scalar_prefetch = 0 : i64, scratch_operands = 0 : i64, tpu.core_type = #tpu.core_type<tc>, window_params = [{transform_indices = @transform_0, window_bounds = array<i64: 2, 4, 361>}, {transform_indices = @transform_1, window_bounds = array<i64: 2, 4>}, {pipeline_mode = #tpu.pipeline_mode<synchronous>, transform_indices = @transform_2, window_bounds = array<i64: 2, 361>}, {pipeline_mode = #tpu.pipeline_mode<synchronous>, transform_indices = @transform_3, window_bounds = array<i64: 2, 361>}]} {
    %c0_i32 = arith.constant 0 : i32
    %0 = arith.cmpi eq, %arg0, %c0_i32 : i32
    %1 = arith.extui %0 : i1 to i32
    %c0_i32_0 = arith.constant 0 : i32
    %2 = arith.cmpi ne, %1, %c0_i32_0 : i32
    scf.if %2 {
      %cst_56 = arith.constant 0.000000e+00 : f32
      %71 = vector.broadcast %cst_56 : f32 to vector<2x361xf32>
      %c0_57 = arith.constant 0 : index
      %c0_58 = arith.constant 0 : index
      %72 = vector.load %arg3[%c0_57, %c0_58] : memref<2x361xf32, #tpu.memory_space<vmem>>, vector<2x361xf32>
      tpu.vector_store %arg3[%c0_57, %c0_58], %71 {strides = array<i32>} : memref<2x361xf32, #tpu.memory_space<vmem>>, vector<2x361xf32>,
      %cst_59 = arith.constant 0.000000e+00 : f32
      %73 = vector.broadcast %cst_59 : f32 to vector<2x361xf32>
      %c0_60 = arith.constant 0 : index
      %c0_61 = arith.constant 0 : index
      %74 = vector.load %arg4[%c0_60, %c0_61] : memref<2x361xf32, #tpu.memory_space<vmem>>, vector<2x361xf32>
      tpu.vector_store %arg4[%c0_60, %c0_61], %73 {strides = array<i32>} : memref<2x361xf32, #tpu.memory_space<vmem>>, vector<2x361xf32>,
    } else {
    }
    %c0 = arith.constant 0 : index
    %c0_1 = arith.constant 0 : index
    %3 = memref.load %arg2[%c0, %c0_1] : memref<2x4xf32, #tpu.memory_space<smem>>
    %c0_2 = arith.constant 0 : index
    %c0_3 = arith.constant 0 : index
    %c0_4 = arith.constant 0 : index
    %4 = vector.load %arg1[%c0_2, %c0_3, %c0_4] : memref<2x4x361xf32, #tpu.memory_space<vmem>>, vector<2x1x361xf32>
    %5 = vector.shape_cast %4 : vector<2x1x361xf32> to vector<2x361xf32>
    %6 = vector.broadcast %3 : f32 to vector<2x361xf32>
    %7 = arith.mulf %6, %5 : vector<2x361xf32>
    %c0_5 = arith.constant 0 : index
    %c1 = arith.constant 1 : index
    %8 = memref.load %arg2[%c0_5, %c1] : memref<2x4xf32, #tpu.memory_space<smem>>
    %c0_6 = arith.constant 0 : index
    %c1_7 = arith.constant 1 : index
    %c0_8 = arith.constant 0 : index
    %9 = vector.load %arg1[%c0_6, %c1_7, %c0_8] : memref<2x4x361xf32, #tpu.memory_space<vmem>>, vector<2x1x361xf32>
    %10 = vector.shape_cast %9 : vector<2x1x361xf32> to vector<2x361xf32>
    %11 = vector.broadcast %8 : f32 to vector<2x361xf32>
    %12 = arith.mulf %11, %10 : vector<2x361xf32>
    %13 = arith.addf %7, %12 : vector<2x361xf32>
    %c0_9 = arith.constant 0 : index
    %c2 = arith.constant 2 : index
    %14 = memref.load %arg2[%c0_9, %c2] : memref<2x4xf32, #tpu.memory_space<smem>>
    %c0_10 = arith.constant 0 : index
    %c2_11 = arith.constant 2 : index
    %c0_12 = arith.constant 0 : index
    %15 = vector.load %arg1[%c0_10, %c2_11, %c0_12] : memref<2x4x361xf32, #tpu.memory_space<vmem>>, vector<2x1x361xf32>
    %16 = vector.shape_cast %15 : vector<2x1x361xf32> to vector<2x361xf32>
    %17 = vector.broadcast %14 : f32 to vector<2x361xf32>
    %18 = arith.mulf %17, %16 : vector<2x361xf32>
    %19 = arith.addf %13, %18 : vector<2x361xf32>
    %c0_13 = arith.constant 0 : index
    %c3 = arith.constant 3 : index
    %20 = memref.load %arg2[%c0_13, %c3] : memref<2x4xf32, #tpu.memory_space<smem>>
    %c0_14 = arith.constant 0 : index
    %c3_15 = arith.constant 3 : index
    %c0_16 = arith.constant 0 : index
    %21 = vector.load %arg1[%c0_14, %c3_15, %c0_16] : memref<2x4x361xf32, #tpu.memory_space<vmem>>, vector<2x1x361xf32>
    %22 = vector.shape_cast %21 : vector<2x1x361xf32> to vector<2x361xf32>
    %23 = vector.broadcast %20 : f32 to vector<2x361xf32>
    %24 = arith.mulf %23, %22 : vector<2x361xf32>
    %25 = arith.addf %19, %24 : vector<2x361xf32>
    %c0_17 = arith.constant 0 : index
    %c0_18 = arith.constant 0 : index
    %26 = vector.load %arg3[%c0_17, %c0_18] : memref<2x361xf32, #tpu.memory_space<vmem>>, vector<1x361xf32>
    %cst = arith.constant dense<0.000000e+00> : vector<361xf32>
    %27 = vector.multi_reduction <add>, %25, %cst [0] : vector<2x361xf32> to vector<361xf32>
    %28 = vector.shape_cast %27 : vector<361xf32> to vector<1x361xf32>
    %29 = arith.addf %26, %28 : vector<1x361xf32>
    %c0_19 = arith.constant 0 : index
    %c0_20 = arith.constant 0 : index
    %30 = vector.load %arg3[%c0_19, %c0_20] : memref<2x361xf32, #tpu.memory_space<vmem>>, vector<1x361xf32>
    tpu.vector_store %arg3[%c0_19, %c0_20], %29 {strides = array<i32>} : memref<2x361xf32, #tpu.memory_space<vmem>>, vector<1x361xf32>,
    %c0_21 = arith.constant 0 : index
    %c0_22 = arith.constant 0 : index
    %31 = vector.load %arg4[%c0_21, %c0_22] : memref<2x361xf32, #tpu.memory_space<vmem>>, vector<1x361xf32>
    %32 = arith.mulf %25, %25 : vector<2x361xf32>
    %cst_23 = arith.constant dense<0.000000e+00> : vector<361xf32>
    %33 = vector.multi_reduction <add>, %32, %cst_23 [0] : vector<2x361xf32> to vector<361xf32>
    %34 = vector.shape_cast %33 : vector<361xf32> to vector<1x361xf32>
    %35 = arith.addf %31, %34 : vector<1x361xf32>
    %c0_24 = arith.constant 0 : index
    %c0_25 = arith.constant 0 : index
    %36 = vector.load %arg4[%c0_24, %c0_25] : memref<2x361xf32, #tpu.memory_space<vmem>>, vector<1x361xf32>
    tpu.vector_store %arg4[%c0_24, %c0_25], %35 {strides = array<i32>} : memref<2x361xf32, #tpu.memory_space<vmem>>, vector<1x361xf32>,
    %c1_26 = arith.constant 1 : index
    %c0_27 = arith.constant 0 : index
    %37 = memref.load %arg2[%c1_26, %c0_27] : memref<2x4xf32, #tpu.memory_space<smem>>
    %c0_28 = arith.constant 0 : index
    %c0_29 = arith.constant 0 : index
    %c0_30 = arith.constant 0 : index
    %38 = vector.load %arg1[%c0_28, %c0_29, %c0_30] : memref<2x4x361xf32, #tpu.memory_space<vmem>>, vector<2x1x361xf32>
    %39 = vector.shape_cast %38 : vector<2x1x361xf32> to vector<2x361xf32>
    %40 = vector.broadcast %37 : f32 to vector<2x361xf32>
    %41 = arith.mulf %40, %39 : vector<2x361xf32>
    %c1_31 = arith.constant 1 : index
    %c1_32 = arith.constant 1 : index
    %42 = memref.load %arg2[%c1_31, %c1_32] : memref<2x4xf32, #tpu.memory_space<smem>>
    %c0_33 = arith.constant 0 : index
    %c1_34 = arith.constant 1 : index
    %c0_35 = arith.constant 0 : index
    %43 = vector.load %arg1[%c0_33, %c1_34, %c0_35] : memref<2x4x361xf32, #tpu.memory_space<vmem>>, vector<2x1x361xf32>
    %44 = vector.shape_cast %43 : vector<2x1x361xf32> to vector<2x361xf32>
    %45 = vector.broadcast %42 : f32 to vector<2x361xf32>
    %46 = arith.mulf %45, %44 : vector<2x361xf32>
    %47 = arith.addf %41, %46 : vector<2x361xf32>
    %c1_36 = arith.constant 1 : index
    %c2_37 = arith.constant 2 : index
    %48 = memref.load %arg2[%c1_36, %c2_37] : memref<2x4xf32, #tpu.memory_space<smem>>
    %c0_38 = arith.constant 0 : index
    %c2_39 = arith.constant 2 : index
    %c0_40 = arith.constant 0 : index
    %49 = vector.load %arg1[%c0_38, %c2_39, %c0_40] : memref<2x4x361xf32, #tpu.memory_space<vmem>>, vector<2x1x361xf32>
    %50 = vector.shape_cast %49 : vector<2x1x361xf32> to vector<2x361xf32>
    %51 = vector.broadcast %48 : f32 to vector<2x361xf32>
    %52 = arith.mulf %51, %50 : vector<2x361xf32>
    %53 = arith.addf %47, %52 : vector<2x361xf32>
    %c1_41 = arith.constant 1 : index
    %c3_42 = arith.constant 3 : index
    %54 = memref.load %arg2[%c1_41, %c3_42] : memref<2x4xf32, #tpu.memory_space<smem>>
    %c0_43 = arith.constant 0 : index
    %c3_44 = arith.constant 3 : index
    %c0_45 = arith.constant 0 : index
    %55 = vector.load %arg1[%c0_43, %c3_44, %c0_45] : memref<2x4x361xf32, #tpu.memory_space<vmem>>, vector<2x1x361xf32>
    %56 = vector.shape_cast %55 : vector<2x1x361xf32> to vector<2x361xf32>
    %57 = vector.broadcast %54 : f32 to vector<2x361xf32>
    %58 = arith.mulf %57, %56 : vector<2x361xf32>
    %59 = arith.addf %53, %58 : vector<2x361xf32>
    %c1_46 = arith.constant 1 : index
    %c0_47 = arith.constant 0 : index
    %60 = vector.load %arg3[%c1_46, %c0_47] : memref<2x361xf32, #tpu.memory_space<vmem>>, vector<1x361xf32>
    %cst_48 = arith.constant dense<0.000000e+00> : vector<361xf32>
    %61 = vector.multi_reduction <add>, %59, %cst_48 [0] : vector<2x361xf32> to vector<361xf32>
    %62 = vector.shape_cast %61 : vector<361xf32> to vector<1x361xf32>
    %63 = arith.addf %60, %62 : vector<1x361xf32>
    %c1_49 = arith.constant 1 : index
    %c0_50 = arith.constant 0 : index
    %64 = vector.load %arg3[%c1_49, %c0_50] : memref<2x361xf32, #tpu.memory_space<vmem>>, vector<1x361xf32>
    tpu.vector_store %arg3[%c1_49, %c0_50], %63 {strides = array<i32>} : memref<2x361xf32, #tpu.memory_space<vmem>>, vector<1x361xf32>,
    %c1_51 = arith.constant 1 : index
    %c0_52 = arith.constant 0 : index
    %65 = vector.load %arg4[%c1_51, %c0_52] : memref<2x361xf32, #tpu.memory_space<vmem>>, vector<1x361xf32>
    %66 = arith.mulf %59, %59 : vector<2x361xf32>
    %cst_53 = arith.constant dense<0.000000e+00> : vector<361xf32>
    %67 = vector.multi_reduction <add>, %66, %cst_53 [0] : vector<2x361xf32> to vector<361xf32>
    %68 = vector.shape_cast %67 : vector<361xf32> to vector<1x361xf32>
    %69 = arith.addf %65, %68 : vector<1x361xf32>
    %c1_54 = arith.constant 1 : index
    %c0_55 = arith.constant 0 : index
    %70 = vector.load %arg4[%c1_54, %c0_55] : memref<2x361xf32, #tpu.memory_space<vmem>>, vector<1x361xf32>
    tpu.vector_store %arg4[%c1_54, %c0_55], %69 {strides = array<i32>} : memref<2x361xf32, #tpu.memory_space<vmem>>, vector<1x361xf32>,
    return
  }
  func.func @transform_0(%arg0: i32) -> (i32, i32, i32) {
    %c0_i32 = arith.constant 0 : i32
    %c0_i32_0 = arith.constant 0 : i32
    %c0_i32_1 = arith.constant 0 : i32
    return %arg0, %c0_i32, %c0_i32_0 : i32, i32, i32
  }
  func.func @transform_1(%arg0: i32) -> (i32, i32) {
    %c0_i32 = arith.constant 0 : i32
    %c0_i32_0 = arith.constant 0 : i32
    %c0_i32_1 = arith.constant 0 : i32
    return %c0_i32, %c0_i32_0 : i32, i32
  }
  func.func @transform_2(%arg0: i32) -> (i32, i32) {
    %c0_i32 = arith.constant 0 : i32
    %c0_i32_0 = arith.constant 0 : i32
    %c0_i32_1 = arith.constant 0 : i32
    return %c0_i32, %c0_i32_0 : i32, i32
  }
  func.func @transform_3(%arg0: i32) -> (i32, i32) {
    %c0_i32 = arith.constant 0 : i32
    %c0_i32_0 = arith.constant 0 : i32
    %c0_i32_1 = arith.constant 0 : i32
    return %c0_i32, %c0_i32_0 : i32, i32
  }
}

module attributes {stable_mosaic.version = 11 : i64} {
  func.func @_apply_kernel(%arg0: i32, %arg1: memref<2x4x361xf32, #tpu.memory_space<vmem>>, %arg2: memref<2x4xf32, #tpu.memory_space<smem>>, %arg3: memref<2x1xf32, #tpu.memory_space<smem>>, %arg4: memref<768x256xf32, #tpu.memory_space<vmem>>, %arg5: memref<1x256xf32, #tpu.memory_space<vmem>>, %arg6: memref<256x1xf32, #tpu.memory_space<vmem>>, %arg7: memref<1x1xf32, #tpu.memory_space<vmem>>, %arg8: memref<2x1xf32, #tpu.memory_space<vmem>>, %arg9: memref<2x768xf32, #tpu.memory_space<vmem>>) attributes {dimension_semantics = [#tpu.dimension_semantics<parallel>], iteration_bounds = array<i64: 1>, scalar_prefetch = 0 : i64, scratch_operands = 1 : i64, tpu.core_type = #tpu.core_type<tc>, window_params = [{transform_indices = @transform_0, window_bounds = array<i64: 2, 4, 361>}, {transform_indices = @transform_1, window_bounds = array<i64: 2, 4>}, {transform_indices = @transform_2, window_bounds = array<i64: 2, 1>}, {pipeline_mode = #tpu.pipeline_mode<synchronous>, transform_indices = @transform_3, window_bounds = array<i64: 768, 256>}, {pipeline_mode = #tpu.pipeline_mode<synchronous>, transform_indices = @transform_4, window_bounds = array<i64: 1, 256>}, {pipeline_mode = #tpu.pipeline_mode<synchronous>, transform_indices = @transform_5, window_bounds = array<i64: 256, 1>}, {pipeline_mode = #tpu.pipeline_mode<synchronous>, transform_indices = @transform_6, window_bounds = array<i64: 1, 1>}, {transform_indices = @transform_7, window_bounds = array<i64: 2, 1>}]} {
    %cst = arith.constant 0.000000e+00 : f32
    %0 = vector.broadcast %cst : f32 to vector<2x23xf32>
    %c0 = arith.constant 0 : index
    %c361 = arith.constant 361 : index
    %1 = vector.load %arg9[%c0, %c361] : memref<2x768xf32, #tpu.memory_space<vmem>>, vector<2x23xf32>
    tpu.vector_store %arg9[%c0, %c361], %0 {strides = array<i32>} : memref<2x768xf32, #tpu.memory_space<vmem>>, vector<2x23xf32>,
    %cst_0 = arith.constant 0.000000e+00 : f32
    %2 = vector.broadcast %cst_0 : f32 to vector<2x23xf32>
    %c0_1 = arith.constant 0 : index
    %c745 = arith.constant 745 : index
    %3 = vector.load %arg9[%c0_1, %c745] : memref<2x768xf32, #tpu.memory_space<vmem>>, vector<2x23xf32>
    tpu.vector_store %arg9[%c0_1, %c745], %2 {strides = array<i32>} : memref<2x768xf32, #tpu.memory_space<vmem>>, vector<2x23xf32>,
    %c0_2 = arith.constant 0 : index
    %c0_3 = arith.constant 0 : index
    %4 = memref.load %arg2[%c0_2, %c0_3] : memref<2x4xf32, #tpu.memory_space<smem>>
    %c0_4 = arith.constant 0 : index
    %c0_5 = arith.constant 0 : index
    %c0_6 = arith.constant 0 : index
    %5 = vector.load %arg1[%c0_4, %c0_5, %c0_6] : memref<2x4x361xf32, #tpu.memory_space<vmem>>, vector<2x1x361xf32>
    %6 = vector.shape_cast %5 : vector<2x1x361xf32> to vector<2x361xf32>
    %7 = vector.broadcast %4 : f32 to vector<2x361xf32>
    %8 = arith.mulf %7, %6 : vector<2x361xf32>
    %c0_7 = arith.constant 0 : index
    %c1 = arith.constant 1 : index
    %9 = memref.load %arg2[%c0_7, %c1] : memref<2x4xf32, #tpu.memory_space<smem>>
    %c0_8 = arith.constant 0 : index
    %c1_9 = arith.constant 1 : index
    %c0_10 = arith.constant 0 : index
    %10 = vector.load %arg1[%c0_8, %c1_9, %c0_10] : memref<2x4x361xf32, #tpu.memory_space<vmem>>, vector<2x1x361xf32>
    %11 = vector.shape_cast %10 : vector<2x1x361xf32> to vector<2x361xf32>
    %12 = vector.broadcast %9 : f32 to vector<2x361xf32>
    %13 = arith.mulf %12, %11 : vector<2x361xf32>
    %14 = arith.addf %8, %13 : vector<2x361xf32>
    %c0_11 = arith.constant 0 : index
    %c2 = arith.constant 2 : index
    %15 = memref.load %arg2[%c0_11, %c2] : memref<2x4xf32, #tpu.memory_space<smem>>
    %c0_12 = arith.constant 0 : index
    %c2_13 = arith.constant 2 : index
    %c0_14 = arith.constant 0 : index
    %16 = vector.load %arg1[%c0_12, %c2_13, %c0_14] : memref<2x4x361xf32, #tpu.memory_space<vmem>>, vector<2x1x361xf32>
    %17 = vector.shape_cast %16 : vector<2x1x361xf32> to vector<2x361xf32>
    %18 = vector.broadcast %15 : f32 to vector<2x361xf32>
    %19 = arith.mulf %18, %17 : vector<2x361xf32>
    %20 = arith.addf %14, %19 : vector<2x361xf32>
    %c0_15 = arith.constant 0 : index
    %c3 = arith.constant 3 : index
    %21 = memref.load %arg2[%c0_15, %c3] : memref<2x4xf32, #tpu.memory_space<smem>>
    %c0_16 = arith.constant 0 : index
    %c3_17 = arith.constant 3 : index
    %c0_18 = arith.constant 0 : index
    %22 = vector.load %arg1[%c0_16, %c3_17, %c0_18] : memref<2x4x361xf32, #tpu.memory_space<vmem>>, vector<2x1x361xf32>
    %23 = vector.shape_cast %22 : vector<2x1x361xf32> to vector<2x361xf32>
    %24 = vector.broadcast %21 : f32 to vector<2x361xf32>
    %25 = arith.mulf %24, %23 : vector<2x361xf32>
    %26 = arith.addf %20, %25 : vector<2x361xf32>
    %c0_19 = arith.constant 0 : index
    %c0_20 = arith.constant 0 : index
    %27 = memref.load %arg3[%c0_19, %c0_20] : memref<2x1xf32, #tpu.memory_space<smem>>
    %28 = vector.broadcast %27 : f32 to vector<2x361xf32>
    %29 = arith.addf %26, %28 : vector<2x361xf32>
    %cst_21 = arith.constant 0.000000e+00 : f32
    %30 = vector.broadcast %cst_21 : f32 to vector<2x361xf32>
    %31 = arith.maximumf %29, %30 : vector<2x361xf32>
    %c0_22 = arith.constant 0 : index
    %c0_23 = arith.constant 0 : index
    %32 = vector.load %arg9[%c0_22, %c0_23] : memref<2x768xf32, #tpu.memory_space<vmem>>, vector<2x361xf32>
    tpu.vector_store %arg9[%c0_22, %c0_23], %31 {strides = array<i32>} : memref<2x768xf32, #tpu.memory_space<vmem>>, vector<2x361xf32>,
    %c1_24 = arith.constant 1 : index
    %c0_25 = arith.constant 0 : index
    %33 = memref.load %arg2[%c1_24, %c0_25] : memref<2x4xf32, #tpu.memory_space<smem>>
    %c0_26 = arith.constant 0 : index
    %c0_27 = arith.constant 0 : index
    %c0_28 = arith.constant 0 : index
    %34 = vector.load %arg1[%c0_26, %c0_27, %c0_28] : memref<2x4x361xf32, #tpu.memory_space<vmem>>, vector<2x1x361xf32>
    %35 = vector.shape_cast %34 : vector<2x1x361xf32> to vector<2x361xf32>
    %36 = vector.broadcast %33 : f32 to vector<2x361xf32>
    %37 = arith.mulf %36, %35 : vector<2x361xf32>
    %c1_29 = arith.constant 1 : index
    %c1_30 = arith.constant 1 : index
    %38 = memref.load %arg2[%c1_29, %c1_30] : memref<2x4xf32, #tpu.memory_space<smem>>
    %c0_31 = arith.constant 0 : index
    %c1_32 = arith.constant 1 : index
    %c0_33 = arith.constant 0 : index
    %39 = vector.load %arg1[%c0_31, %c1_32, %c0_33] : memref<2x4x361xf32, #tpu.memory_space<vmem>>, vector<2x1x361xf32>
    %40 = vector.shape_cast %39 : vector<2x1x361xf32> to vector<2x361xf32>
    %41 = vector.broadcast %38 : f32 to vector<2x361xf32>
    %42 = arith.mulf %41, %40 : vector<2x361xf32>
    %43 = arith.addf %37, %42 : vector<2x361xf32>
    %c1_34 = arith.constant 1 : index
    %c2_35 = arith.constant 2 : index
    %44 = memref.load %arg2[%c1_34, %c2_35] : memref<2x4xf32, #tpu.memory_space<smem>>
    %c0_36 = arith.constant 0 : index
    %c2_37 = arith.constant 2 : index
    %c0_38 = arith.constant 0 : index
    %45 = vector.load %arg1[%c0_36, %c2_37, %c0_38] : memref<2x4x361xf32, #tpu.memory_space<vmem>>, vector<2x1x361xf32>
    %46 = vector.shape_cast %45 : vector<2x1x361xf32> to vector<2x361xf32>
    %47 = vector.broadcast %44 : f32 to vector<2x361xf32>
    %48 = arith.mulf %47, %46 : vector<2x361xf32>
    %49 = arith.addf %43, %48 : vector<2x361xf32>
    %c1_39 = arith.constant 1 : index
    %c3_40 = arith.constant 3 : index
    %50 = memref.load %arg2[%c1_39, %c3_40] : memref<2x4xf32, #tpu.memory_space<smem>>
    %c0_41 = arith.constant 0 : index
    %c3_42 = arith.constant 3 : index
    %c0_43 = arith.constant 0 : index
    %51 = vector.load %arg1[%c0_41, %c3_42, %c0_43] : memref<2x4x361xf32, #tpu.memory_space<vmem>>, vector<2x1x361xf32>
    %52 = vector.shape_cast %51 : vector<2x1x361xf32> to vector<2x361xf32>
    %53 = vector.broadcast %50 : f32 to vector<2x361xf32>
    %54 = arith.mulf %53, %52 : vector<2x361xf32>
    %55 = arith.addf %49, %54 : vector<2x361xf32>
    %c1_44 = arith.constant 1 : index
    %c0_45 = arith.constant 0 : index
    %56 = memref.load %arg3[%c1_44, %c0_45] : memref<2x1xf32, #tpu.memory_space<smem>>
    %57 = vector.broadcast %56 : f32 to vector<2x361xf32>
    %58 = arith.addf %55, %57 : vector<2x361xf32>
    %cst_46 = arith.constant 0.000000e+00 : f32
    %59 = vector.broadcast %cst_46 : f32 to vector<2x361xf32>
    %60 = arith.maximumf %58, %59 : vector<2x361xf32>
    %c0_47 = arith.constant 0 : index
    %c384 = arith.constant 384 : index
    %61 = vector.load %arg9[%c0_47, %c384] : memref<2x768xf32, #tpu.memory_space<vmem>>, vector<2x361xf32>
    tpu.vector_store %arg9[%c0_47, %c384], %60 {strides = array<i32>} : memref<2x768xf32, #tpu.memory_space<vmem>>, vector<2x361xf32>,
    %c0_48 = arith.constant 0 : index
    %c0_49 = arith.constant 0 : index
    %62 = vector.load %arg9[%c0_48, %c0_49] : memref<2x768xf32, #tpu.memory_space<vmem>>, vector<2x768xf32>
    %c0_50 = arith.constant 0 : index
    %c0_51 = arith.constant 0 : index
    %63 = vector.load %arg4[%c0_50, %c0_51] : memref<768x256xf32, #tpu.memory_space<vmem>>, vector<768x256xf32>
    %cst_52 = arith.constant dense<0.000000e+00> : vector<2x256xf32>
    %64 = tpu.matmul %62, %63, %cst_52 {dimension_numbers = #tpu.dot_dimension_numbers<[1], [0], [0], [1], [0, 0, 1, 1], [], []>} : vector<2x768xf32>, vector<768x256xf32>, vector<2x256xf32> -> vector<2x256xf32>
    %c0_53 = arith.constant 0 : index
    %c0_54 = arith.constant 0 : index
    %65 = vector.load %arg5[%c0_53, %c0_54] : memref<1x256xf32, #tpu.memory_space<vmem>>, vector<1x256xf32>
    %66 = vector.broadcast %65 : vector<1x256xf32> to vector<2x256xf32>
    %67 = arith.addf %64, %66 : vector<2x256xf32>
    %cst_55 = arith.constant 0.000000e+00 : f32
    %68 = vector.broadcast %cst_55 : f32 to vector<2x256xf32>
    %69 = arith.maximumf %67, %68 : vector<2x256xf32>
    %c0_56 = arith.constant 0 : index
    %c0_57 = arith.constant 0 : index
    %70 = vector.load %arg6[%c0_56, %c0_57] : memref<256x1xf32, #tpu.memory_space<vmem>>, vector<256x1xf32>
    %cst_58 = arith.constant dense<0.000000e+00> : vector<2x1xf32>
    %71 = tpu.matmul %69, %70, %cst_58 {dimension_numbers = #tpu.dot_dimension_numbers<[1], [0], [0], [1], [0, 0, 1, 1], [], []>} : vector<2x256xf32>, vector<256x1xf32>, vector<2x1xf32> -> vector<2x1xf32>
    %c0_59 = arith.constant 0 : index
    %c0_60 = arith.constant 0 : index
    %72 = vector.load %arg7[%c0_59, %c0_60] : memref<1x1xf32, #tpu.memory_space<vmem>>, vector<1x1xf32>
    %73 = vector.broadcast %72 : vector<1x1xf32> to vector<2x1xf32>
    %74 = arith.addf %71, %73 : vector<2x1xf32>
    %75 = math.tanh %74 : vector<2x1xf32>
    %c0_61 = arith.constant 0 : index
    %c0_62 = arith.constant 0 : index
    %76 = vector.load %arg8[%c0_61, %c0_62] : memref<2x1xf32, #tpu.memory_space<vmem>>, vector<2x1xf32>
    tpu.vector_store %arg8[%c0_61, %c0_62], %75 {strides = array<i32>} : memref<2x1xf32, #tpu.memory_space<vmem>>, vector<2x1xf32>,
    return
  }
  func.func @transform_0(%arg0: i32) -> (i32, i32, i32) {
    %c0_i32 = arith.constant 0 : i32
    %c0_i32_0 = arith.constant 0 : i32
    %c0_i32_1 = arith.constant 0 : i32
    return %arg0, %c0_i32, %c0_i32_0 : i32, i32, i32
  }
  func.func @transform_1(%arg0: i32) -> (i32, i32) {
    %c0_i32 = arith.constant 0 : i32
    %c0_i32_0 = arith.constant 0 : i32
    %c0_i32_1 = arith.constant 0 : i32
    return %c0_i32, %c0_i32_0 : i32, i32
  }
  func.func @transform_2(%arg0: i32) -> (i32, i32) {
    %c0_i32 = arith.constant 0 : i32
    %c0_i32_0 = arith.constant 0 : i32
    %c0_i32_1 = arith.constant 0 : i32
    return %c0_i32, %c0_i32_0 : i32, i32
  }
  func.func @transform_3(%arg0: i32) -> (i32, i32) {
    %c0_i32 = arith.constant 0 : i32
    %c0_i32_0 = arith.constant 0 : i32
    %c0_i32_1 = arith.constant 0 : i32
    return %c0_i32, %c0_i32_0 : i32, i32
  }
  func.func @transform_4(%arg0: i32) -> (i32, i32) {
    %c0_i32 = arith.constant 0 : i32
    %c0_i32_0 = arith.constant 0 : i32
    %c0_i32_1 = arith.constant 0 : i32
    return %c0_i32, %c0_i32_0 : i32, i32
  }
  func.func @transform_5(%arg0: i32) -> (i32, i32) {
    %c0_i32 = arith.constant 0 : i32
    %c0_i32_0 = arith.constant 0 : i32
    %c0_i32_1 = arith.constant 0 : i32
    return %c0_i32, %c0_i32_0 : i32, i32
  }
  func.func @transform_6(%arg0: i32) -> (i32, i32) {
    %c0_i32 = arith.constant 0 : i32
    %c0_i32_0 = arith.constant 0 : i32
    %c0_i32_1 = arith.constant 0 : i32
    return %c0_i32, %c0_i32_0 : i32, i32
  }
  func.func @transform_7(%arg0: i32) -> (i32, i32) {
    %c0_i32 = arith.constant 0 : i32
    %c0_i32_0 = arith.constant 0 : i32
    return %arg0, %c0_i32 : i32, i32
  }
}

</mosaic_0001>

<bundles_post_ra>
// kernel: value_forward.2
= control target key start
LH: loop header
LB: loop body
LE: loop exit
PB: predicated region body
PF: predicated region fallthrough
CT: control target
= control target key end

     0   :  { %9 = vsyncpa [#allocation3], 0  ;;  %s644_s0 = inlined_call_operand.vmem [shape: f32[2,4,361], index: 0, kind: input, shape index: {}]   ;;  %s645_s1 = inlined_call_operand.vmem [shape: f32[2,4], index: 1, kind: input, shape index: {}]   ;;  %s646_s2 = inlined_call_operand.vmem [shape: f32[2,361], index: 2, kind: output, shape index: {0}]   ;;  %s647_s3 = inlined_call_operand.vmem [shape: f32[2,361], index: 3, kind: output, shape index: {1}]  }
   0x1   :  { %s18_s14 = sshll.u32 %s645_s1, 4  ;;  %s19_s14 = int_to_ptr.vmem [resolvable:$true] %s18_s14 }
   0x2   :  { %s473_s15 = scalar_lea.vmem %s19_s14, 32  ;;  %p478_p1 = scmp.lt.s32.totalorder %s19_s14, %s19_s14 }
   0x3   :  { %p474_p0 = scmp.ne.s32.totalorder %s19_s14, %s473_s15  ;;  %p479_p2 = scmp.lt.s32.totalorder %s473_s15, %s473_s15 }
   0x5   :  { %p480_p3 = por %p479_p2, %p478_p1 }
   0x7   :  { %p481_p4 = pnand %p480_p3, %p474_p0 }
   0x9   :  { %484 = shalt.err (!%p481_p4)
}
   0xa   :  { %s487_s16 = smov [#allocation2]  }
   0xb   :  { %21 = dma.vmem_to_smem %s19_s14, 32, %s487_s16, [#allocation3]  }
   0xc   :  { %485 = dma.done.wait [#allocation3], 32  }
   0xd   :  { %486 = vsyncadd [#allocation3], 4294967264 }
   0xe   :  { %25 = sfence }
   0xf   :  { %vm30_vm0 = vcmask 1041408   ;;  %vm31_vm1 = vcmask 1043458   ;;  %vm33_vm2 = vcmask 857092   ;;  %s37_s17 = sld [smem:[#allocation2]]  ;;  %v488_v0 = vmov 0.0  }
  0x10   :  { %vm32_vm3 = vmor %vm31_vm1, %vm30_vm0  ;;  %s446_s1 = sld [smem:[#allocation2 + $0x1]]  ;;  %v38_v1 = vld [vmem:[%s644_s0] ss:$4 sm:$0x7]  ;;  %v81_v4 = vlaneseq  ;;  %v489_v11 = vmov 1966171168  }
  0x11   :  { %vm34_vm4 = vmor %vm33_vm2, %vm32_vm3  ;;  %s449_s24 = sld [smem:[#allocation2 + $0x2]]  ;;  %v445_v2 = vld [vmem:[%s644_s0 + $0xc] ss:$4 sm:$0x7]  ;;  %v79_v12 = vunpack.c.l.s4 %v489_v11  ;;  %vm119_vm5 = vcmask 852992  }
  0x12   :  { %35 = vst.msk [vmem:[%s646_s2] sm:$0x3f] %vm34_vm4, %v488_v0  ;;  %36 = vst.msk [vmem:[%s647_s3] sm:$0x3f] %vm34_vm4, %v488_v0  ;;  %s452_s4 = sld [smem:[#allocation2 + $0x3]]  ;;  %v82_v14 = vshrl.u32 %v81_v4, 7 }
  0x13   :  { %v447_v3 = vld [vmem:[%s644_s0 + $0x1] ss:$4 sm:$0x7]  ;;  %v448_v5 = vld [vmem:[%s644_s0 + $0xd] ss:$4 sm:$0x7]  ;;  %v80_v22 = vunpack.c.0.s8 %v79_v12 }
  0x14   :  { %v450_v7 = vld [vmem:[%s644_s0 + $0x2] ss:$4 sm:$0x7]  ;;  %v451_v10 = vld [vmem:[%s644_s0 + $0xe] ss:$4 sm:$0x7] }
  0x15   :  { %v41_v6 = vstv %s37_s17  ;;  %s455_s9 = sld [smem:[#allocation2 + $0x80]]  ;;  %v453_v18 = vld [vmem:[%s644_s0 + $0x3] ss:$4 sm:$0x7]  ;;  %v557_v35 = vsub.s32 %v80_v22, %v82_v14  ;;  %vm600_vm6 = vcmp.lt.s32.totalorder %v81_v4, 361 }
  0x16   :  { %v42_v8 = vmul.f32 %v41_v6, %v38_v1  ;;  %v43_v9 = vmul.f32 %v445_v2, %v41_v6  ;;  %v49_v13 = vstv %s446_s1  ;;  %s457_s10 = sld [smem:[#allocation2 + $0x81]]  ;;  %v454_v19 = vld [vmem:[%s644_s0 + $0xf] ss:$4 sm:$0x7] }
  0x17   :  { %v50_v15 = vmul.f32 %v447_v3, %v49_v13  ;;  %v51_v16 = vmul.f32 %v448_v5, %v49_v13  ;;  %v59_v17 = vstv %s449_s24  ;;  %v243_v23 = vld [vmem:[%s644_s0] ss:$4 sm:$0x7]  ;;  %v456_v24 = vld [vmem:[%s644_s0 + $0xc] ss:$4 sm:$0x7] }
  0x18   :  { %v60_v20 = vmul.f32 %v450_v7, %v59_v17  ;;  %v61_v21 = vmul.f32 %v451_v10, %v59_v17  ;;  %v69_v27 = vstv %s452_s4  ;;  %v458_v28 = vld [vmem:[%s644_s0 + $0x1] ss:$4 sm:$0x7]  ;;  %s460_s20 = sld [smem:[#allocation2 + $0x82]] }
  0x19   :  { %v52_v25 = vadd.f32 %v50_v15, %v42_v8  ;;  %v53_v26 = vadd.f32 %v51_v16, %v43_v9  ;;  %v70_v29 = vmul.f32 %v453_v18, %v69_v27  ;;  %v71_v30 = vmul.f32 %v454_v19, %v69_v27  ;;  %v459_v31 = vld [vmem:[%s644_s0 + $0xd] ss:$4 sm:$0x7]  ;;  %s463_s23 = sld [smem:[#allocation2 + $0x83]] }
  0x1a   :  { %v461_v43 = vld [vmem:[%s644_s0 + $0x2] ss:$4 sm:$0x7]  ;;  %v462_v44 = vld [vmem:[%s644_s0 + $0xe] ss:$4 sm:$0x7] }
  0x1b   :  { %v62_v32 = vadd.f32 %v60_v20, %v52_v25  ;;  %v63_v33 = vadd.f32 %v61_v21, %v53_v26  ;;  %v245_v34 = vstv %s455_s9  ;;  %v464_v49 = vld [vmem:[%s644_s0 + $0x3] ss:$4 sm:$0x7]  ;;  %v465_v50 = vld [vmem:[%s644_s0 + $0xf] ss:$4 sm:$0x7] }
  0x1c   :  { %v246_v36 = vmul.f32 %v245_v34, %v243_v23  ;;  %v247_v37 = vmul.f32 %v456_v24, %v245_v34  ;;  %v251_v38 = vstv %s457_s10 }
  0x1d   :  { %v72_v39 = vadd.f32 %v70_v29, %v62_v32  ;;  %v73_v40 = vadd.f32 %v71_v30, %v63_v33  ;;  %v252_v41 = vmul.f32 %v458_v28, %v251_v38  ;;  %v253_v42 = vmul.f32 %v459_v31, %v251_v38 }
  0x1e   :  { %v259_v52 = vstv %s460_s20 }
  0x1f   :  { %v77_v45 = vcombine.low %v72_v39, %v73_v40  ;;  %v161_v46 = vmul.f32 %v72_v39, %v72_v39  ;;  %v162_v47 = vmul.f32 %v73_v40, %v73_v40  ;;  %v254_v48 = vadd.f32 %v252_v41, %v246_v36 }
  0x20   :  { %v255_v51 = vadd.f32 %v253_v42, %v247_v37  ;;  %v267_v53 = vstv %s463_s23  ;;  %v260_v56 = vmul.f32 %v461_v43, %v259_v52  ;;  %v261_v57 = vmul.f32 %v462_v44, %v259_v52 }
  0x21   :  { %v84_v54 = vrot.slane %v77_v45, %v557_v35  ;;  %v165_v55 = vcombine.low %v161_v46, %v162_v47  ;;  %v268_v58 = vmul.f32 %v464_v49, %v267_v53  ;;  %v269_v59 = vmul.f32 %v465_v50, %v267_v53 }
  0x22   :  { %v262_v63 = vadd.f32 %v260_v56, %v254_v48  ;;  %v263_v0 = vadd.f32 %v261_v57, %v255_v51 }
  0x23   :  { %v85_v60 = vcombine.high %v84_v54, %v84_v54  ;;  %v92_v61 = vrot.slane %v84_v54, %v557_v35  ;;  %v172_v62 = vrot.slane %v165_v55, %v557_v35 }
  0x24   :  { %v270_v8 = vadd.f32 %v268_v58, %v262_v63  ;;  %v271_v12 = vadd.f32 %v269_v59, %v263_v0 }
  0x25   :  { %v99_v1 = vrot.slane %v85_v60, %v557_v35  ;;  %v100_v2 = vcombine.high %v92_v61, %v92_v61  ;;  %v105_v3 = vsel %vm30_vm0, %v92_v61, 0.0  ;;  %v173_v5 = vcombine.high %v172_v62, %v172_v62 }
  0x26   :  { %v106_v6 = vrot.slane %v105_v3, 4  ;;  %v180_v7 = vrot.slane %v172_v62, %v557_v35  ;;  %v276_v19 = vcombine.low %v270_v8, %v271_v12  ;;  %v355_v20 = vmul.f32 %v270_v8, %v270_v8 }
  0x27   :  { %v112_v9 = vsel %vm30_vm0, %v99_v1, 0.0  ;;  %v120_v10 = vsel %vm119_vm5, %v100_v2, 0.0  ;;  %v187_v11 = vrot.slane %v173_v5, %v557_v35  ;;  %v356_v28 = vmul.f32 %v271_v12, %v271_v12 }
  0x28   :  { %v107_v13 = vadd.f32 %v106_v6, %v105_v3  ;;  %v113_v14 = vrot.slane %v112_v9, 4  ;;  %v121_v15 = vrot.slane %v120_v10, 4  ;;  %v188_v16 = vcombine.high %v180_v7, %v180_v7 }
  0x29   :  { %v192_v17 = vsel %vm30_vm0, %v180_v7, 0.0  ;;  %v199_v18 = vsel %vm30_vm0, %v187_v11, 0.0  ;;  %v283_v27 = vrot.slane %v276_v19, %v557_v35 }
  0x2a   :  { %v108_v21 = vrot.slane %v107_v13, 2  ;;  %v114_v22 = vadd.f32 %v113_v14, %v112_v9  ;;  %v122_v23 = vadd.f32 %v121_v15, %v120_v10  ;;  %v193_v24 = vrot.slane %v192_v17, 4 }
  0x2b   :  { %v200_v25 = vrot.slane %v199_v18, 4  ;;  %v206_v26 = vsel %vm119_vm5, %v188_v16, 0.0  ;;  %v284_v36 = vcombine.high %v283_v27, %v283_v27  ;;  %v291_v37 = vrot.slane %v283_v27, %v557_v35 }
  0x2c   :  { %v109_v29 = vadd.f32 %v108_v21, %v107_v13  ;;  %v115_v30 = vrot.slane %v114_v22, 2  ;;  %v123_v31 = vrot.slane %v122_v23, 2  ;;  %v194_v32 = vadd.f32 %v193_v24, %v192_v17  ;;  %v74_v17 = vld [vmem:[%s646_s2] ss:$2 sm:$0x7] }
  0x2d   :  { %v201_v33 = vadd.f32 %v200_v25, %v199_v18  ;;  %v207_v34 = vrot.slane %v206_v26, 4  ;;  %v298_v44 = vrot.slane %v284_v36, %v557_v35  ;;  %v299_v45 = vcombine.high %v291_v37, %v291_v37 }
  0x2e   :  { %v110_v38 = vrot.slane %v109_v29, 1  ;;  %v116_v39 = vadd.f32 %v115_v30, %v114_v22  ;;  %v124_v40 = vadd.f32 %v123_v31, %v122_v23  ;;  %v195_v41 = vrot.slane %v194_v32, 2  ;;  %v160_v31 = vld [vmem:[%s647_s3] ss:$2 sm:$0x7] }
  0x2f   :  { %v202_v42 = vrot.slane %v201_v33, 2  ;;  %v208_v43 = vadd.f32 %v207_v34, %v206_v26  ;;  %v303_v52 = vsel %vm30_vm0, %v291_v37, 0.0  ;;  %v310_v53 = vsel %vm30_vm0, %v298_v44, 0.0 }
  0x30   :  { %v111_v46 = vadd.f32 %v110_v38, %v109_v29  ;;  %v117_v47 = vrot.slane %v116_v39, 1  ;;  %v125_v48 = vrot.slane %v124_v40, 1  ;;  %v196_v49 = vadd.f32 %v195_v41, %v194_v32 }
  0x31   :  { %v203_v50 = vadd.f32 %v202_v42, %v201_v33  ;;  %v209_v51 = vrot.slane %v208_v43, 2  ;;  %v304_v57 = vrot.slane %v303_v52, 4  ;;  %v311_v60 = vrot.slane %v310_v53, 4 }
  0x32   :  { %v118_v54 = vadd.f32 %v117_v47, %v116_v39  ;;  %v126_v55 = vadd.f32 %v125_v48, %v124_v40  ;;  %v197_v56 = vrot.slane %v196_v49, 1  ;;  %v317_v61 = vsel %vm119_vm5, %v299_v45, 0.0 }
  0x33   :  { %v204_v58 = vrot.slane %v203_v50, 1  ;;  %v210_v59 = vadd.f32 %v209_v51, %v208_v43  ;;  %v305_v1 = vadd.f32 %v304_v57, %v303_v52  ;;  %v312_v5 = vadd.f32 %v311_v60, %v310_v53 }
  0x34   :  { %v130_v62 = vcombine.low %v111_v46, %v118_v54  ;;  %v144_v63 = vrot.slane %v126_v55, %v557_v35  ;;  %v198_v0 = vadd.f32 %v197_v56, %v196_v49  ;;  %v318_v6 = vrot.slane %v317_v61, 4  ;;  %v466_v55 = vld [vmem:[%s646_s2 + $0x1] ss:$2 sm:$0x7] }
  0x35   :  { %v205_v2 = vadd.f32 %v204_v58, %v203_v50  ;;  %v211_v3 = vrot.slane %v210_v59, 1  ;;  %v306_v8 = vrot.slane %v305_v1, 2  ;;  %v359_v9 = vcombine.low %v355_v20, %v356_v28 }
  0x36   :  { %v137_v7 = vrot.slane %v130_v62, %v557_v35  ;;  %v313_v12 = vrot.slane %v312_v5, 2  ;;  %v319_v13 = vadd.f32 %v318_v6, %v317_v61 }
  0x37   :  { %v212_v10 = vadd.f32 %v211_v3, %v210_v59  ;;  %v216_v11 = vcombine.low %v198_v0, %v205_v2  ;;  %v307_v15 = vadd.f32 %v306_v8, %v305_v1  ;;  %v366_v16 = vrot.slane %v359_v9, %v557_v35  ;;  %v468_v9 = vld [vmem:[%s647_s3 + $0x1] ss:$2 sm:$0x7] }
  0x38   :  { %v145_v14 = vcombine.low %v137_v7, %v144_v63  ;;  %v314_v21 = vadd.f32 %v313_v12, %v312_v5  ;;  %v320_v22 = vrot.slane %v319_v13, 2 }
  0x39   :  { %v223_v18 = vrot.slane %v216_v11, %v557_v35  ;;  %v230_v19 = vrot.slane %v212_v10, %v557_v35  ;;  %v308_v23 = vrot.slane %v307_v15, 1  ;;  %v367_v24 = vcombine.high %v366_v16, %v366_v16 }
  0x3a   :  { %v152_v20 = vrot.slane %v145_v14, %v557_v35  ;;  %v374_v25 = vrot.slane %v366_v16, %v557_v35  ;;  %v315_v28 = vrot.slane %v314_v21, 1  ;;  %v321_v29 = vadd.f32 %v320_v22, %v319_v13 }
  0x3b   :  { %v231_v27 = vcombine.low %v223_v18, %v230_v19  ;;  %v309_v32 = vadd.f32 %v308_v23, %v307_v15  ;;  %v381_v33 = vrot.slane %v367_v24, %v557_v35 }
  0x3c   :  { %v154_v30 = vadd.f32 %v152_v20, %v74_v17  ;;  %v382_v34 = vcombine.high %v374_v25, %v374_v25  ;;  %v316_v37 = vadd.f32 %v315_v28, %v314_v21  ;;  %v322_v38 = vrot.slane %v321_v29, 1 }
  0x3d   :  { %v238_v36 = vrot.slane %v231_v27, %v557_v35  ;;  %v386_v4 = vsel %vm30_vm0, %v374_v25, 0.0  ;;  %v393_v40 = vsel %vm30_vm0, %v381_v33, 0.0 }
  0x3e   :  { %159 = vst.msk [vmem:[%s646_s2] ss:$2 sm:$0x7] %vm600_vm6, %v154_v30  ;;  %v387_v39 = vrot.slane %v386_v4, 4  ;;  %v400_v41 = vsel %vm119_vm5, %v382_v34, 0.0  ;;  %v323_v43 = vadd.f32 %v322_v38, %v321_v29  ;;  %v327_v44 = vcombine.low %v309_v32, %v316_v37 }
  0x3f   :  { %v240_v42 = vadd.f32 %v238_v36, %v160_v31  ;;  %v394_v45 = vrot.slane %v393_v40, 4  ;;  %v401_v47 = vrot.slane %v400_v41, 4 }
  0x40   :  { %v388_v46 = vadd.f32 %v387_v39, %v386_v4  ;;  %v334_v48 = vrot.slane %v327_v44, %v557_v35  ;;  %v341_v49 = vrot.slane %v323_v43, %v557_v35 }
  0x41   :  { %241 = vst.msk [vmem:[%s647_s3] ss:$2 sm:$0x7] %vm600_vm6, %v240_v42  ;;  %v395_v50 = vadd.f32 %v394_v45, %v393_v40  ;;  %v402_v52 = vadd.f32 %v401_v47, %v400_v41 }
  0x42   :  { %v389_v51 = vrot.slane %v388_v46, 2  ;;  %v342_v53 = vcombine.low %v334_v48, %v341_v49 }
  0x43   :  { %v396_v54 = vrot.slane %v395_v50, 2  ;;  %v403_v57 = vrot.slane %v402_v52, 2 }
  0x44   :  { %v390_v56 = vadd.f32 %v389_v51, %v388_v46  ;;  %v349_v58 = vrot.slane %v342_v53, %v557_v35 }
  0x45   :  { %v397_v59 = vadd.f32 %v396_v54, %v395_v50  ;;  %v404_v61 = vadd.f32 %v403_v57, %v402_v52 }
  0x46   :  { %v391_v60 = vrot.slane %v390_v56, 1  ;;  %v351_v62 = vadd.f32 %v466_v55, %v349_v58 }
  0x47   :  { %v398_v63 = vrot.slane %v397_v59, 1  ;;  %v405_v1 = vrot.slane %v404_v61, 1 }
  0x48   :  { %v392_v0 = vadd.f32 %v391_v60, %v390_v56  ;;  %467 = vst.msk [vmem:[%s646_s2 + $0x1] ss:$2 sm:$0x7] %vm600_vm6, %v351_v62 }
  0x49   :  { %v399_v2 = vadd.f32 %v398_v63, %v397_v59  ;;  %v406_v3 = vadd.f32 %v405_v1, %v404_v61 }
  0x4b   :  { %v410_v5 = vcombine.low %v392_v0, %v399_v2  ;;  %v424_v6 = vrot.slane %v406_v3, %v557_v35 }
  0x4d   :  { %v417_v7 = vrot.slane %v410_v5, %v557_v35 }
  0x4f   :  { %v425_v8 = vcombine.low %v417_v7, %v424_v6 }
  0x51   :  { %v432_v10 = vrot.slane %v425_v8, %v557_v35 }
  0x53   :  { %v434_v11 = vadd.f32 %v468_v9, %v432_v10 }
  0x55   :  { %469 = vst.msk [vmem:[%s647_s3 + $0x1] ss:$2 sm:$0x7] %vm600_vm6, %v434_v11 }
  0x56   :  { %444 = vsyncpa [#allocation3], 1 }

// kernel: value_forward.3
= control target key start
LH: loop header
LB: loop body
LE: loop exit
PB: predicated region body
PF: predicated region fallthrough
CT: control target
= control target key end

     0   :  { %s1142_s0 = inlined_call_operand.vmem [shape: f32[2,4,361], index: 0, kind: input, shape index: {}]   ;;  %s1143_s1 = inlined_call_operand.vmem [shape: f32[2,4], index: 1, kind: input, shape index: {}]   ;;  %s1144_s2 = inlined_call_operand.vmem [shape: f32[2,1], index: 2, kind: input, shape index: {}]   ;;  %s1145_s3 = inlined_call_operand.hbm [shape: f32[768,256], index: 3, kind: input, shape index: {}]   ;;  %s1146_s4 = inlined_call_operand.vmem [shape: f32[1,256], index: 4, kind: input, shape index: {}]   ;;  %s1147_s5 = inlined_call_operand.vmem [shape: f32[256,1], index: 5, kind: input, shape index: {}]   ;;  %s1148_s6 = inlined_call_operand.<no memory space> [shape: f32[1,1], index: 6, kind: input, shape index: {}]   ;;  %s1149_s7 = inlined_call_operand.vmem [shape: f32[2,1], index: 7, kind: output, shape index: {}]  }
   0x1   :  { %v12_v0 = vstv %s1148_s6 }
   0x2   :  { %13 = vst [vmem:[#allocation3] sm:$0x1] %v12_v0 }
   0x3   :  { %14 = vsyncpa [#allocation6], 0 }
   0x4   :  { %15 = vsyncpa [#allocation8], 0  ;;  %s25_s28 = sshll.u32 %s1143_s1, 4  ;;  %s26_s28 = int_to_ptr.vmem [resolvable:$true] %s25_s28 }
   0x5   :  { %16 = vsyncpa [#allocation5], 0  ;;  %s35_s8 = sshll.u32 %s1144_s2, 4  ;;  %s821_s9 = scalar_lea.vmem %s26_s28, 32  ;;  %s36_s8 = int_to_ptr.vmem [resolvable:$true] %s35_s8 }
   0x6   :  { %p822_p0 = scmp.ne.s32.totalorder %s26_s28, %s821_s9  ;;  %p826_p1 = scmp.lt.s32.totalorder %s26_s28, %s26_s28 }
   0x7   :  { %p827_p2 = scmp.lt.s32.totalorder %s821_s9, %s821_s9 }
   0x9   :  { %p828_p3 = por %p827_p2, %p826_p1 }
   0xb   :  { %p829_p4 = pnand %p828_p3, %p822_p0 }
   0xd   :  { %832 = shalt.err (!%p829_p4)
}
   0xe   :  { %s871_s6 = smov [#allocation4]   ;;  %s833_s10 = scalar_lea.vmem %s36_s8, 32 }
   0xf   :  { %28 = dma.vmem_to_smem %s26_s28, 32, %s871_s6, [#allocation6]  }
  0x10   :  { %p834_p5 = scmp.ne.s32.totalorder %s36_s8, %s833_s10  ;;  %p838_p6 = scmp.lt.s32.totalorder %s36_s8, %s36_s8 }
  0x11   :  { %p839_p7 = scmp.lt.s32.totalorder %s833_s10, %s833_s10 }
  0x13   :  { %p840_p8 = por %p839_p7, %p838_p6 }
  0x15   :  { %p841_p9 = pnand %p840_p8, %p834_p5 }
  0x17   :  { %844 = shalt.err (!%p841_p9)
}
  0x18   :  { %s872_s1 = smov [#allocation7]   ;;  %s873_s2 = smov [#allocation9]  }
  0x19   :  { %38 = dma.vmem_to_smem %s36_s8, 32, %s872_s1, [#allocation8]  }
  0x1a   :  { %s44_s11 = sshll.u32 %s873_s2, 4  ;;  %s45_s11 = int_to_ptr.vmem [resolvable:$true] %s44_s11 }
  0x1b   :  { %s853_s12 = scalar_lea.vmem %s45_s11, 24576  ;;  %p858_p11 = scmp.lt.s32.totalorder %s45_s11, %s45_s11 }
  0x1c   :  { %p854_p10 = scmp.ne.s32.totalorder %s45_s11, %s853_s12  ;;  %p859_p12 = scmp.lt.s32.totalorder %s853_s12, %s853_s12 }
  0x1e   :  { %p860_p13 = por %p859_p12, %p858_p11 }
  0x20   :  { %p861_p0 = pnand %p860_p13, %p854_p10 }
  0x22   :  { %864 = shalt.err (!%p861_p0)
}
  0x23   :  { %s874_s13 = smov 256   ;;  %s875_s14 = smov 16  }
  0x24   :  { %50 = dma.hbm_to_vmem [thread:$0]  %s1145_s3, 24576, %s45_s11, [#allocation5], %s874_s13, %s874_s13, %s875_s14  }
  0x25   :  { %865 = dma.done.wait [#allocation6], 32  }
  0x26   :  { %866 = vsyncadd [#allocation6], 4294967264 }
  0x27   :  { %867 = dma.done.wait [#allocation8], 32  }
  0x28   :  { %868 = vsyncadd [#allocation8], 4294967264 }
  0x29   :  { %869 = dma.done.wait [#allocation5], 24576  }
  0x2a   :  { %870 = vsyncadd [#allocation5], 4294942720 }
  0x2b   :  { %66 = sfence }
  0x2c   :  { %v211_v1 = vld [vmem:[#allocation9 + $0xf8] sm:$0xff]  ;;  %v210_v2 = vld [vmem:[#allocation9 + $0xf0] sm:$0xff]  ;;  %v209_v3 = vld [vmem:[#allocation9 + $0xe8] sm:$0xff]  ;;  %vm67_vm0 = vcmask 1042248   ;;  %v876_v7 = vmov 0.0   ;;  %s931_s3 = sld [smem:[#allocation4]] }
  0x2d   :  { %417 = vmatprep.subr.mxu0 %v211_v1  ;;  %v275_v4 = vld [vmem:[#allocation9 + $0x2f8] sm:$0xff]  ;;  %v208_v5 = vld [vmem:[#allocation9 + $0xe0] sm:$0xff]  ;;  %v274_v6 = vld [vmem:[#allocation9 + $0x2f0] sm:$0xff]  ;;  %68 = vst.msk [vmem:[#allocation2 + $0x4] sm:$0x3] %vm67_vm0, %v876_v7  ;;  %s933_s17 = sld [smem:[#allocation4 + $0x1]] }
  0x2e   :  { %69 = vst.msk [vmem:[#allocation2 + $0xa] sm:$0x3] %vm67_vm0, %v876_v7  ;;  %418 = vmatpush1.msra.mxu0 %v210_v2  ;;  %488 = vmatprep.subr.mxu1 %v275_v4  ;;  %v207_v8 = vld [vmem:[#allocation9 + $0xd8] sm:$0xff]  ;;  %v273_v9 = vld [vmem:[#allocation9 + $0x2e8] sm:$0xff]  ;;  %v206_v10 = vld [vmem:[#allocation9 + $0xd0] sm:$0xff]  ;;  %s935_s18 = sld [smem:[#allocation4 + $0x2]] }
  0x2f   :  { %419 = vmatprep.subr.mxu0 %v209_v3  ;;  %489 = vmatpush1.msra.mxu1 %v274_v6  ;;  %v272_v11 = vld [vmem:[#allocation9 + $0x2e0] sm:$0xff]  ;;  %v271_v12 = vld [vmem:[#allocation9 + $0x2d8] sm:$0xff]  ;;  %v205_v13 = vld [vmem:[#allocation9 + $0xc8] sm:$0xff]  ;;  %s937_s19 = sld [smem:[#allocation4 + $0x3]]  ;;  %vm124_vm1 = vcmask 1041408   ;;  %vm125_vm2 = vcmask 1043458  }
  0x30   :  { %420 = vmatpush1.msra.mxu0 %v208_v5  ;;  %490 = vmatprep.subr.mxu1 %v273_v9  ;;  %v270_v14 = vld [vmem:[#allocation9 + $0x2d0] sm:$0xff]  ;;  %v204_v15 = vld [vmem:[#allocation9 + $0xc0] sm:$0xff]  ;;  %v269_v16 = vld [vmem:[#allocation9 + $0x2c8] sm:$0xff]  ;;  %s939_s20 = sld [smem:[#allocation7]]  ;;  %vm127_vm4 = vcmask 857092   ;;  %vm742_vm6 = vcmask 1024  }
  0x31   :  { %421 = vmatprep.subr.mxu0 %v207_v8  ;;  %491 = vmatpush1.msra.mxu1 %v272_v11  ;;  %v203_v17 = vld [vmem:[#allocation9 + $0xb8] sm:$0xff]  ;;  %v268_v18 = vld [vmem:[#allocation9 + $0x2c0] sm:$0xff]  ;;  %v202_v19 = vld [vmem:[#allocation9 + $0xb0] sm:$0xff]  ;;  %s941_s21 = sld [smem:[#allocation4 + $0x80]] }
  0x32   :  { %422 = vmatpush1.msra.mxu0 %v206_v10  ;;  %492 = vmatprep.subr.mxu1 %v271_v12  ;;  %v267_v20 = vld [vmem:[#allocation9 + $0x2b8] sm:$0xff]  ;;  %v201_v21 = vld [vmem:[#allocation9 + $0xa8] sm:$0xff]  ;;  %v266_v22 = vld [vmem:[#allocation9 + $0x2b0] sm:$0xff]  ;;  %s943_s22 = sld [smem:[#allocation4 + $0x81]] }
  0x33   :  { %423 = vmatprep.subr.mxu0 %v205_v13  ;;  %493 = vmatpush1.msra.mxu1 %v270_v14  ;;  %v200_v23 = vld [vmem:[#allocation9 + $0xa0] sm:$0xff]  ;;  %v265_v24 = vld [vmem:[#allocation9 + $0x2a8] sm:$0xff]  ;;  %v199_v25 = vld [vmem:[#allocation9 + $0x98] sm:$0xff]  ;;  %s945_s23 = sld [smem:[#allocation4 + $0x82]] }
  0x34   :  { %424 = vmatpush1.msra.mxu0 %v204_v15  ;;  %494 = vmatprep.subr.mxu1 %v269_v16  ;;  %v264_v26 = vld [vmem:[#allocation9 + $0x2a0] sm:$0xff]  ;;  %v198_v27 = vld [vmem:[#allocation9 + $0x90] sm:$0xff]  ;;  %v263_v28 = vld [vmem:[#allocation9 + $0x298] sm:$0xff]  ;;  %s948_s24 = sld [smem:[#allocation4 + $0x83]] }
  0x35   :  { %425 = vmatprep.subr.mxu0 %v203_v17  ;;  %495 = vmatpush1.msra.mxu1 %v268_v18  ;;  %v197_v29 = vld [vmem:[#allocation9 + $0x88] sm:$0xff]  ;;  %v262_v30 = vld [vmem:[#allocation9 + $0x290] sm:$0xff]  ;;  %v196_v31 = vld [vmem:[#allocation9 + $0x80] sm:$0xff]  ;;  %s951_s25 = sld [smem:[#allocation7 + $0x80]] }
  0x36   :  { %426 = vmatpush1.msra.mxu0 %v202_v19  ;;  %496 = vmatprep.subr.mxu1 %v267_v20  ;;  %v261_v32 = vld [vmem:[#allocation9 + $0x288] sm:$0xff]  ;;  %v195_v33 = vld [vmem:[#allocation9 + $0x78] sm:$0xff]  ;;  %v260_v34 = vld [vmem:[#allocation9 + $0x280] sm:$0xff] }
  0x37   :  { %427 = vmatprep.subr.mxu0 %v201_v21  ;;  %497 = vmatpush1.msra.mxu1 %v266_v22  ;;  %v194_v35 = vld [vmem:[#allocation9 + $0x70] sm:$0xff]  ;;  %v259_v36 = vld [vmem:[#allocation9 + $0x278] sm:$0xff]  ;;  %v193_v37 = vld [vmem:[#allocation9 + $0x68] sm:$0xff] }
  0x38   :  { %428 = vmatpush1.msra.mxu0 %v200_v23  ;;  %498 = vmatprep.subr.mxu1 %v265_v24  ;;  %v258_v38 = vld [vmem:[#allocation9 + $0x270] sm:$0xff]  ;;  %v192_v39 = vld [vmem:[#allocation9 + $0x60] sm:$0xff]  ;;  %v257_v40 = vld [vmem:[#allocation9 + $0x268] sm:$0xff]  ;;  %v74_v23 = vstv %s931_s3 }
  0x39   :  { %429 = vmatprep.subr.mxu0 %v199_v25  ;;  %499 = vmatpush1.msra.mxu1 %v264_v26  ;;  %v191_v41 = vld [vmem:[#allocation9 + $0x58] sm:$0xff]  ;;  %v256_v42 = vld [vmem:[#allocation9 + $0x260] sm:$0xff]  ;;  %v190_v43 = vld [vmem:[#allocation9 + $0x50] sm:$0xff] }
  0x3a   :  { %430 = vmatpush1.msra.mxu0 %v198_v27  ;;  %500 = vmatprep.subr.mxu1 %v263_v28  ;;  %v255_v44 = vld [vmem:[#allocation9 + $0x258] sm:$0xff]  ;;  %v189_v45 = vld [vmem:[#allocation9 + $0x48] sm:$0xff]  ;;  %v254_v46 = vld [vmem:[#allocation9 + $0x250] sm:$0xff]  ;;  %v82_v27 = vstv %s933_s17 }
  0x3b   :  { %431 = vmatprep.subr.mxu0 %v197_v29  ;;  %501 = vmatpush1.msra.mxu1 %v262_v30  ;;  %v188_v47 = vld [vmem:[#allocation9 + $0x40] sm:$0xff]  ;;  %v253_v48 = vld [vmem:[#allocation9 + $0x248] sm:$0xff]  ;;  %v187_v49 = vld [vmem:[#allocation9 + $0x38] sm:$0xff] }
  0x3c   :  { %432 = vmatpush1.msra.mxu0 %v196_v31  ;;  %502 = vmatprep.subr.mxu1 %v261_v32  ;;  %v252_v50 = vld [vmem:[#allocation9 + $0x240] sm:$0xff]  ;;  %v186_v51 = vld [vmem:[#allocation9 + $0x30] sm:$0xff]  ;;  %v251_v52 = vld [vmem:[#allocation9 + $0x238] sm:$0xff]  ;;  %v92_v32 = vstv %s935_s18 }
  0x3d   :  { %433 = vmatprep.subr.mxu0 %v195_v33  ;;  %503 = vmatpush1.msra.mxu1 %v260_v34  ;;  %v185_v53 = vld [vmem:[#allocation9 + $0x28] sm:$0xff]  ;;  %v250_v54 = vld [vmem:[#allocation9 + $0x230] sm:$0xff]  ;;  %v184_v55 = vld [vmem:[#allocation9 + $0x20] sm:$0xff] }
  0x3e   :  { %434 = vmatpush1.msra.mxu0 %v194_v35  ;;  %504 = vmatprep.subr.mxu1 %v259_v36  ;;  %v249_v56 = vld [vmem:[#allocation9 + $0x228] sm:$0xff]  ;;  %v183_v57 = vld [vmem:[#allocation9 + $0x18] sm:$0xff]  ;;  %v248_v58 = vld [vmem:[#allocation9 + $0x220] sm:$0xff] }
  0x3f   :  { %435 = vmatprep.subr.mxu0 %v193_v37  ;;  %505 = vmatpush1.msra.mxu1 %v258_v38  ;;  %v182_v59 = vld [vmem:[#allocation9 + $0x10] sm:$0xff]  ;;  %v247_v60 = vld [vmem:[#allocation9 + $0x218] sm:$0xff]  ;;  %v181_v61 = vld [vmem:[#allocation9 + $0x8] sm:$0xff]  ;;  %v102_v38 = vstv %s937_s19 }
  0x40   :  { %436 = vmatpush1.msra.mxu0 %v192_v39  ;;  %506 = vmatprep.subr.mxu1 %v257_v40  ;;  %v246_v62 = vld [vmem:[#allocation9 + $0x210] sm:$0xff]  ;;  %v180_v63 = vld [vmem:[#allocation9] sm:$0xff]  ;;  %v245_v0 = vld [vmem:[#allocation9 + $0x208] sm:$0xff] }
  0x41   :  { %437 = vmatprep.subr.mxu0 %v191_v41  ;;  %507 = vmatpush1.msra.mxu1 %v256_v42  ;;  %v243_v1 = vld [vmem:[#allocation9 + $0x1f8] sm:$0xff]  ;;  %v244_v2 = vld [vmem:[#allocation9 + $0x200] sm:$0xff]  ;;  %v242_v3 = vld [vmem:[#allocation9 + $0x1f0] sm:$0xff] }
  0x42   :  { %438 = vmatpush1.msra.mxu0 %v190_v43  ;;  %508 = vmatprep.subr.mxu1 %v255_v44  ;;  %v307_v4 = vld [vmem:[#allocation9 + $0x3f8] sm:$0xff]  ;;  %v241_v5 = vld [vmem:[#allocation9 + $0x1e8] sm:$0xff]  ;;  %v306_v6 = vld [vmem:[#allocation9 + $0x3f0] sm:$0xff] }
  0x43   :  { %439 = vmatprep.subr.mxu0 %v189_v45  ;;  %509 = vmatpush1.msra.mxu1 %v254_v46  ;;  %v240_v7 = vld [vmem:[#allocation9 + $0x1e0] sm:$0xff]  ;;  %v305_v8 = vld [vmem:[#allocation9 + $0x3e8] sm:$0xff]  ;;  %v239_v9 = vld [vmem:[#allocation9 + $0x1d8] sm:$0xff]  ;;  %v133_v45 = vstv %s941_s21 }
  0x44   :  { %440 = vmatpush1.msra.mxu0 %v188_v47  ;;  %510 = vmatprep.subr.mxu1 %v253_v48  ;;  %v304_v10 = vld [vmem:[#allocation9 + $0x3e0] sm:$0xff]  ;;  %v238_v11 = vld [vmem:[#allocation9 + $0x1d0] sm:$0xff]  ;;  %v303_v12 = vld [vmem:[#allocation9 + $0x3d8] sm:$0xff] }
  0x45   :  { %441 = vmatprep.subr.mxu0 %v187_v49  ;;  %511 = vmatpush1.msra.mxu1 %v252_v50  ;;  %v237_v13 = vld [vmem:[#allocation9 + $0x1c8] sm:$0xff]  ;;  %v302_v14 = vld [vmem:[#allocation9 + $0x3d0] sm:$0xff]  ;;  %v236_v15 = vld [vmem:[#allocation9 + $0x1c0] sm:$0xff] }
  0x46   :  { %442 = vmatpush1.msra.mxu0 %v186_v51  ;;  %512 = vmatprep.subr.mxu1 %v251_v52  ;;  %v301_v16 = vld [vmem:[#allocation9 + $0x3c8] sm:$0xff]  ;;  %v235_v17 = vld [vmem:[#allocation9 + $0x1b8] sm:$0xff]  ;;  %v234_v18 = vld [vmem:[#allocation9 + $0x1b0] sm:$0xff]  ;;  %v119_v52 = vlaneseq }
  0x47   :  { %443 = vmatprep.subr.mxu0 %v185_v53  ;;  %513 = vmatpush1.msra.mxu1 %v250_v54  ;;  %v300_v19 = vld [vmem:[#allocation9 + $0x3c0] sm:$0xff]  ;;  %v233_v20 = vld [vmem:[#allocation9 + $0x1a8] sm:$0xff]  ;;  %v299_v21 = vld [vmem:[#allocation9 + $0x3b8] sm:$0xff]  ;;  %v139_v53 = vstv %s943_s22 }
  0x48   :  { %444 = vmatpush1.msra.mxu0 %v184_v55  ;;  %514 = vmatprep.subr.mxu1 %v249_v56  ;;  %v232_v22 = vld [vmem:[#allocation9 + $0x1a0] sm:$0xff]  ;;  %v298_v24 = vld [vmem:[#allocation9 + $0x3b0] sm:$0xff]  ;;  %v231_v25 = vld [vmem:[#allocation9 + $0x198] sm:$0xff] }
  0x49   :  { %445 = vmatprep.subr.mxu0 %v183_v57  ;;  %515 = vmatpush1.msra.mxu1 %v248_v58  ;;  %v297_v26 = vld [vmem:[#allocation9 + $0x3a8] sm:$0xff]  ;;  %v230_v28 = vld [vmem:[#allocation9 + $0x190] sm:$0xff]  ;;  %v296_v29 = vld [vmem:[#allocation9 + $0x3a0] sm:$0xff] }
  0x4a   :  { %446 = vmatpush1.msra.mxu0 %v182_v59  ;;  %516 = vmatprep.subr.mxu1 %v247_v60  ;;  %v295_v30 = vld [vmem:[#allocation9 + $0x398] sm:$0xff]  ;;  %v229_v33 = vld [vmem:[#allocation9 + $0x188] sm:$0xff]  ;;  %v294_v34 = vld [vmem:[#allocation9 + $0x390] sm:$0xff] }
  0x4b   :  { %447 = vmatprep.subr.mxu0 %v181_v61  ;;  %517 = vmatpush1.msra.mxu1 %v246_v62  ;;  %v71_v31 = vld [vmem:[%s1142_s0] ss:$4 sm:$0x7]  ;;  %v751_v35 = vld [vmem:[%s1142_s0 + $0xc] ss:$4 sm:$0x7]  ;;  %v147_v61 = vstv %s945_s23  ;;  %vm1017_vm3 = vmor %vm125_vm2, %vm124_vm1 }
  0x4c   :  { %448 = vmatpush1.msra.mxu0 %v180_v63  ;;  %518 = vmatprep.subr.mxu1 %v245_v0  ;;  %v75_v36 = vmul.f32 %v74_v23, %v71_v31  ;;  %v753_v37 = vld [vmem:[%s1142_s0 + $0x1] ss:$4 sm:$0x7]  ;;  %v228_v39 = vld [vmem:[#allocation9 + $0x180] sm:$0xff]  ;;  %v293_v40 = vld [vmem:[#allocation9 + $0x388] sm:$0xff]  ;;  %v76_v41 = vmul.f32 %v751_v35, %v74_v23 }
  0x4d   :  { %449 = vmatprep.subr.mxu0 %v243_v1  ;;  %519 = vmatpush1.msra.mxu1 %v244_v2  ;;  %v754_v42 = vld [vmem:[%s1142_s0 + $0xd] ss:$4 sm:$0x7]  ;;  %v83_v43 = vmul.f32 %v753_v37, %v82_v27  ;;  %v756_v44 = vld [vmem:[%s1142_s0 + $0x2] ss:$4 sm:$0x7]  ;;  %vm1024_vm5 = vmor %vm127_vm4, %vm1017_vm3 }
  0x4e   :  { %450 = vmatpush2.msra.mxu0 %v242_v3  ;;  %520 = vmatprep.subr.mxu1 %v307_v4  ;;  %v227_v46 = vld [vmem:[#allocation9 + $0x178] sm:$0xff]  ;;  %v292_v47 = vld [vmem:[#allocation9 + $0x380] sm:$0xff]  ;;  %v84_v48 = vmul.f32 %v754_v42, %v82_v27  ;;  %v93_v50 = vmul.f32 %v756_v44, %v92_v32  ;;  %v226_v54 = vld [vmem:[#allocation9 + $0x170] sm:$0xff]  ;;  %v877_v2 = vmov 1935823168  }
  0x4f   :  { %451 = vmatprep.subr.mxu0 %v241_v5  ;;  %521 = vmatpush2.msra.mxu1 %v306_v6  ;;  %v757_v49 = vld [vmem:[%s1142_s0 + $0xe] ss:$4 sm:$0x7]  ;;  %v759_v51 = vld [vmem:[%s1142_s0 + $0x3] ss:$4 sm:$0x7]  ;;  %v85_v56 = vadd.f32 %v83_v43, %v75_v36  ;;  %v985_v3 = vunpack.c.l.s4 %v877_v2 }
  0x50   :  { %452 = vmatpush2.msra.mxu0 %v240_v7  ;;  %522 = vmatprep.subr.mxu1 %v305_v8  ;;  %v291_v55 = vld [vmem:[#allocation9 + $0x378] sm:$0xff]  ;;  %v94_v57 = vmul.f32 %v757_v49, %v92_v32  ;;  %v760_v58 = vld [vmem:[%s1142_s0 + $0xf] ss:$4 sm:$0x7]  ;;  %v103_v59 = vmul.f32 %v759_v51, %v102_v38  ;;  %v290_v63 = vld [vmem:[#allocation9 + $0x370] sm:$0xff]  ;;  %v86_v0 = vadd.f32 %v84_v48, %v76_v41  ;;  %v161_v41 = vstv %s951_s25 }
  0x51   :  { %453 = vmatprep.subr.mxu0 %v239_v9  ;;  %523 = vmatpush2.msra.mxu1 %v304_v10  ;;  %v131_v60 = vld [vmem:[%s1142_s0] ss:$4 sm:$0x7]  ;;  %v225_v62 = vld [vmem:[#allocation9 + $0x168] sm:$0xff]  ;;  %v104_v1 = vmul.f32 %v760_v58, %v102_v38  ;;  %v95_v7 = vadd.f32 %v93_v50, %v85_v56  ;;  %v288_v27 = vld [vmem:[#allocation9 + $0x360] sm:$0xff] }
  0x52   :  { %454 = vmatpush2.msra.mxu0 %v238_v11  ;;  %524 = vmatprep.subr.mxu1 %v303_v12  ;;  %v762_v4 = vld [vmem:[%s1142_s0 + $0xc] ss:$4 sm:$0x7]  ;;  %v134_v5 = vmul.f32 %v133_v45, %v131_v60  ;;  %v764_v6 = vld [vmem:[%s1142_s0 + $0x1] ss:$4 sm:$0x7]  ;;  %v155_v12 = vstv %s948_s24 }
  0x53   :  { %455 = vmatprep.subr.mxu0 %v237_v13  ;;  %525 = vmatpush2.msra.mxu1 %v302_v14  ;;  %v135_v8 = vmul.f32 %v762_v4, %v133_v45  ;;  %v765_v9 = vld [vmem:[%s1142_s0 + $0xd] ss:$4 sm:$0x7]  ;;  %v140_v10 = vmul.f32 %v764_v6, %v139_v53  ;;  %v767_v11 = vld [vmem:[%s1142_s0 + $0x2] ss:$4 sm:$0x7]  ;;  %v96_v13 = vadd.f32 %v94_v57, %v86_v0  ;;  %v108_v14 = vstv %s939_s20 }
  0x54   :  { %456 = vmatpush2.msra.mxu0 %v236_v15  ;;  %526 = vmatprep.subr.mxu1 %v301_v16  ;;  %v141_v15 = vmul.f32 %v765_v9, %v139_v53  ;;  %v768_v16 = vld [vmem:[%s1142_s0 + $0xe] ss:$4 sm:$0x7]  ;;  %v222_v32 = vld [vmem:[#allocation9 + $0x150] sm:$0xff]  ;;  %v283_v53 = vld [vmem:[#allocation9 + $0x338] sm:$0xff] }
  0x55   :  { %457 = vmatprep.subr.mxu0 %v235_v17  ;;  %527 = vmatpush2.msra.mxu1 %v300_v19  ;;  %v148_v17 = vmul.f32 %v767_v11, %v147_v61  ;;  %v224_v19 = vld [vmem:[#allocation9 + $0x160] sm:$0xff]  ;;  %v142_v23 = vadd.f32 %v140_v10, %v134_v5  ;;  %v221_v37 = vld [vmem:[#allocation9 + $0x148] sm:$0xff]  ;;  %v286_v38 = vld [vmem:[#allocation9 + $0x350] sm:$0xff] }
  0x56   :  { %458 = vmatpush2.msra.mxu0 %v234_v18  ;;  %528 = vmatprep.subr.mxu1 %v299_v21  ;;  %v770_v18 = vld [vmem:[%s1142_s0 + $0x3] ss:$4 sm:$0x7]  ;;  %v105_v21 = vadd.f32 %v103_v59, %v95_v7  ;;  %v220_v42 = vld [vmem:[#allocation9 + $0x140] sm:$0xff]  ;;  %v285_v43 = vld [vmem:[#allocation9 + $0x348] sm:$0xff] }
  0x57   :  { %459 = vmatprep.subr.mxu0 %v233_v20  ;;  %529 = vmatpush2.msra.mxu1 %v298_v24  ;;  %v289_v20 = vld [vmem:[#allocation9 + $0x368] sm:$0xff]  ;;  %v149_v24 = vmul.f32 %v768_v16, %v147_v61  ;;  %v156_v31 = vmul.f32 %v770_v18, %v155_v12  ;;  %v150_v35 = vadd.f32 %v148_v17, %v142_v23  ;;  %v282_v56 = vld [vmem:[#allocation9 + $0x330] sm:$0xff]  ;;  %v216_v59 = vld [vmem:[#allocation9 + $0x120] sm:$0xff]  ;;  %v878_v7 = vmov 1983009808  }
  0x58   :  { %460 = vmatpush2.msra.mxu0 %v232_v22  ;;  %530 = vmatprep.subr.mxu1 %v297_v26  ;;  %v1007_v22 = vshrl.u32 %v119_v52, 7  ;;  %v223_v26 = vld [vmem:[#allocation9 + $0x158] sm:$0xff]  ;;  %v218_v52 = vld [vmem:[#allocation9 + $0x130] sm:$0xff]  ;;  %v281_v60 = vld [vmem:[#allocation9 + $0x328] sm:$0xff] }
  0x59   :  { %461 = vmatprep.subr.mxu0 %v231_v25  ;;  %531 = vmatpush2.msra.mxu1 %v296_v29  ;;  %v771_v25 = vld [vmem:[%s1142_s0 + $0xf] ss:$4 sm:$0x7]  ;;  %v118_v29 = vunpack.c.0.s8 %v985_v3  ;;  %v158_v45 = vadd.f32 %v156_v31, %v150_v35  ;;  %v214_v3 = vld [vmem:[#allocation9 + $0x110] sm:$0xff]  ;;  %v279_v4 = vld [vmem:[#allocation9 + $0x318] sm:$0xff] }
  0x5a   :  { %462 = vmatpush2.msra.mxu0 %v230_v28  ;;  %532 = vmatprep.subr.mxu1 %v295_v30  ;;  %v106_v28 = vadd.f32 %v104_v1, %v96_v13  ;;  %v143_v30 = vadd.f32 %v141_v15, %v135_v8  ;;  %v157_v36 = vmul.f32 %v771_v25, %v155_v12  ;;  %v280_v0 = vld [vmem:[#allocation9 + $0x320] sm:$0xff]  ;;  %v213_v5 = vld [vmem:[#allocation9 + $0x108] sm:$0xff]  ;;  %v388_v8 = vunpack.c.l.s4 %v878_v7  ;;  %v278_v9 = vld [vmem:[#allocation9 + $0x310] sm:$0xff] }
  0x5b   :  { %463 = vmatprep.subr.mxu0 %v229_v33  ;;  %533 = vmatpush2.msra.mxu1 %v294_v34  ;;  %v287_v33 = vld [vmem:[#allocation9 + $0x358] sm:$0xff]  ;;  %v109_v34 = vadd.f32 %v108_v14, %v105_v21  ;;  %v121_v49 = vsub.s32 %v118_v29, %v1007_v22  ;;  %v212_v10 = vld [vmem:[#allocation9 + $0x100] sm:$0xff]  ;;  %v277_v11 = vld [vmem:[#allocation9 + $0x308] sm:$0xff] }
  0x5c   :  { %464 = vmatpush2.msra.mxu0 %v228_v39  ;;  %534 = vmatprep.subr.mxu1 %v293_v40  ;;  %v110_v39 = vadd.f32 %v108_v14, %v106_v28  ;;  %v151_v40 = vadd.f32 %v149_v24, %v143_v30  ;;  %v339_v13 = vld [vmem:[#allocation9 + $0x4f8] sm:$0xff]  ;;  %v276_v14 = vld [vmem:[#allocation9 + $0x300] sm:$0xff]  ;;  %v389_v15 = vunpack.c.0.s8 %v388_v8  ;;  %v338_v24 = vld [vmem:[#allocation9 + $0x4f0] sm:$0xff] }
  0x5d   :  { %465 = vmatprep.subr.mxu0 %v227_v46  ;;  %535 = vmatpush2.msra.mxu1 %v292_v47  ;;  %v111_v44 = vmax.f32 %v109_v34, 0.0  ;;  %v219_v46 = vld [vmem:[#allocation9 + $0x138] sm:$0xff]  ;;  %v284_v47 = vld [vmem:[#allocation9 + $0x340] sm:$0xff]  ;;  %v334_v30 = vld [vmem:[#allocation9 + $0x4d0] sm:$0xff] }
  0x5e   :  { %466 = vmatpush2.msra.mxu0 %v226_v54  ;;  %536 = vmatprep.subr.mxu1 %v291_v55  ;;  %v112_v48 = vmax.f32 %v110_v39, 0.0  ;;  %v159_v51 = vadd.f32 %v157_v36, %v151_v40  ;;  %v162_v54 = vadd.f32 %v161_v41, %v158_v45  ;;  %v217_v55 = vld [vmem:[#allocation9 + $0x128] sm:$0xff]  ;;  %v392_v16 = vsub.s32 %v389_v15, %v1007_v22  ;;  %v336_v28 = vld [vmem:[#allocation9 + $0x4e0] sm:$0xff]  ;;  %v335_v29 = vld [vmem:[#allocation9 + $0x4d8] sm:$0xff] }
  0x5f   :  { %467 = vmatprep.subr.mxu0 %v225_v62  ;;  %537 = vmatpush2.msra.mxu1 %v290_v63  ;;  %v215_v63 = vld [vmem:[#allocation9 + $0x118] sm:$0xff]  ;;  %v333_v31 = vld [vmem:[#allocation9 + $0x4c8] sm:$0xff]  ;;  %v330_v34 = vld [vmem:[#allocation9 + $0x4b0] sm:$0xff] }
  0x60   :  { %468 = vmatpush2.msra.mxu0 %v224_v19  ;;  %538 = vmatprep.subr.mxu1 %v289_v20  ;;  %v115_v57 = vcombine.low %v111_v44, %v112_v48  ;;  %v163_v58 = vadd.f32 %v161_v41, %v159_v51  ;;  %v164_v62 = vmax.f32 %v162_v54, 0.0  ;;  %v329_v35 = vld [vmem:[#allocation9 + $0x4a8] sm:$0xff]  ;;  %v328_v36 = vld [vmem:[#allocation9 + $0x4a0] sm:$0xff]  ;;  %v323_v41 = vld [vmem:[#allocation9 + $0x478] sm:$0xff] }
  0x61   :  { %469 = vmatprep.subr.mxu0 %v223_v26  ;;  %539 = vmatpush2.msra.mxu1 %v288_v27  ;;  %v337_v26 = vld [vmem:[#allocation9 + $0x4e8] sm:$0xff]  ;;  %v324_v40 = vld [vmem:[#allocation9 + $0x480] sm:$0xff]  ;;  %v319_v45 = vld [vmem:[#allocation9 + $0x458] sm:$0xff] }
  0x62   :  { %470 = vmatpush2.msra.mxu0 %v222_v32  ;;  %540 = vmatprep.subr.mxu1 %v287_v33  ;;  %v122_v1 = vrot.slane %v115_v57, %v121_v49  ;;  %v165_v2 = vmax.f32 %v163_v58, 0.0  ;;  %v332_v32 = vld [vmem:[#allocation9 + $0x4c0] sm:$0xff]  ;;  %v331_v33 = vld [vmem:[#allocation9 + $0x4b8] sm:$0xff]  ;;  %v325_v39 = vld [vmem:[#allocation9 + $0x488] sm:$0xff] }
  0x63   :  { %471 = vmatprep.subr.mxu0 %v221_v37  ;;  %541 = vmatpush2.msra.mxu1 %v286_v38  ;;  %v327_v37 = vld [vmem:[#allocation9 + $0x498] sm:$0xff]  ;;  %v326_v38 = vld [vmem:[#allocation9 + $0x490] sm:$0xff]  ;;  %v320_v44 = vld [vmem:[#allocation9 + $0x460] sm:$0xff] }
  0x64   :  { %472 = vmatpush2.msra.mxu0 %v220_v42  ;;  %542 = vmatprep.subr.mxu1 %v285_v43  ;;  %129 = vst.msk [vmem:[#allocation2] sm:$0x3f] %vm1024_vm5, %v122_v1  ;;  %v168_v6 = vcombine.low %v164_v62, %v165_v2  ;;  %v322_v42 = vld [vmem:[#allocation9 + $0x470] sm:$0xff]  ;;  %v321_v43 = vld [vmem:[#allocation9 + $0x468] sm:$0xff]  ;;  %v316_v48 = vld [vmem:[#allocation9 + $0x440] sm:$0xff] }
  0x65   :  { %473 = vmatprep.subr.mxu0 %v219_v46  ;;  %543 = vmatpush2.msra.mxu1 %v284_v47  ;;  %v318_v46 = vld [vmem:[#allocation9 + $0x450] sm:$0xff]  ;;  %v317_v47 = vld [vmem:[#allocation9 + $0x448] sm:$0xff]  ;;  %v371_v57 = vld [vmem:[#allocation9 + $0x5f8] sm:$0xff] }
  0x66   :  { %474 = vmatpush2.msra.mxu0 %v218_v52  ;;  %544 = vmatprep.subr.mxu1 %v283_v53  ;;  %v175_v12 = vrot.slane %v168_v6, %v121_v49  ;;  %v315_v49 = vld [vmem:[#allocation9 + $0x438] sm:$0xff]  ;;  %v314_v50 = vld [vmem:[#allocation9 + $0x430] sm:$0xff]  ;;  %v313_v51 = vld [vmem:[#allocation9 + $0x428] sm:$0xff] }
  0x67   :  { %475 = vmatprep.subr.mxu0 %v217_v55  ;;  %545 = vmatpush2.msra.mxu1 %v282_v56  ;;  %v312_v52 = vld [vmem:[#allocation9 + $0x420] sm:$0xff]  ;;  %v311_v53 = vld [vmem:[#allocation9 + $0x418] sm:$0xff]  ;;  %v310_v54 = vld [vmem:[#allocation9 + $0x410] sm:$0xff] }
  0x68   :  { %476 = vmatpush2.msra.mxu0 %v216_v59  ;;  %546 = vmatprep.subr.mxu1 %v281_v60  ;;  %177 = vst.msk [vmem:[#allocation2 + $0x6] sm:$0x3f] %vm1024_vm5, %v175_v12  ;;  %v309_v55 = vld [vmem:[#allocation9 + $0x408] sm:$0xff]  ;;  %v308_v56 = vld [vmem:[#allocation9 + $0x400] sm:$0xff]  ;;  %v370_v58 = vld [vmem:[#allocation9 + $0x5f0] sm:$0xff] }
  0x69   :  { %477 = vmatprep.subr.mxu0 %v215_v63  ;;  %547 = vmatpush2.msra.mxu1 %v280_v0  ;;  %v369_v59 = vld [vmem:[#allocation9 + $0x5e8] sm:$0xff]  ;;  %v368_v60 = vld [vmem:[#allocation9 + $0x5e0] sm:$0xff]  ;;  %v367_v61 = vld [vmem:[#allocation9 + $0x5d8] sm:$0xff] }
  0x6a   :  { %478 = vmatpush2.msra.mxu0 %v214_v3  ;;  %548 = vmatprep.subr.mxu1 %v279_v4  ;;  %v366_v62 = vld [vmem:[#allocation9 + $0x5d0] sm:$0xff]  ;;  %v365_v63 = vld [vmem:[#allocation9 + $0x5c8] sm:$0xff]  ;;  %v364_v0 = vld [vmem:[#allocation9 + $0x5c0] sm:$0xff] }
  0x6b   :  { %479 = vmatprep.subr.mxu0 %v213_v5  ;;  %549 = vmatpush2.msra.mxu1 %v278_v9  ;;  %v363_v1 = vld [vmem:[#allocation9 + $0x5b8] sm:$0xff]  ;;  %v362_v2 = vld [vmem:[#allocation9 + $0x5b0] sm:$0xff]  ;;  %v361_v3 = vld [vmem:[#allocation9 + $0x5a8] sm:$0xff] }
  0x6c   :  { %480 = vmatpush2.msra.mxu0 %v212_v10  ;;  %550 = vmatprep.subr.mxu1 %v277_v11  ;;  %v360_v4 = vld [vmem:[#allocation9 + $0x5a0] sm:$0xff]  ;;  %v359_v5 = vld [vmem:[#allocation9 + $0x598] sm:$0xff]  ;;  %v358_v6 = vld [vmem:[#allocation9 + $0x590] sm:$0xff] }
  0x6d   :  { %559 = vmatprep.subr.mxu0 %v339_v13  ;;  %551 = vmatpush2.msra.mxu1 %v276_v14  ;;  %v357_v7 = vld [vmem:[#allocation9 + $0x588] sm:$0xff]  ;;  %v356_v8 = vld [vmem:[#allocation9 + $0x580] sm:$0xff]  ;;  %v355_v9 = vld [vmem:[#allocation9 + $0x578] sm:$0xff] }
  0x6e   :  { %v354_v10 = vld [vmem:[#allocation9 + $0x570] sm:$0xff]  ;;  %v353_v11 = vld [vmem:[#allocation9 + $0x568] sm:$0xff]  ;;  %v352_v12 = vld [vmem:[#allocation9 + $0x560] sm:$0xff] }
  0x6f   :  { %v178_v17 = vld [vmem:[#allocation2] sm:$0xff]  ;;  %v1033_v20 = vld.sshfl [vmem:[#allocation2 + $0x8] sm:$0x33 pattern:$0x76325410]  ;;  %v349_v15 = vld [vmem:[#allocation9 + $0x548] sm:$0xff] }
  0x70   :  { %v393_v18 = vrot.slane %v178_v17, %v392_v16  ;;  %v386_v19 = vcombine.high %v178_v17, %v178_v17  ;;  %v410_v27 = vcombine.high %v1033_v20, %v1033_v20  ;;  %v351_v13 = vld [vmem:[#allocation9 + $0x558] sm:$0xff]  ;;  %v350_v14 = vld [vmem:[#allocation9 + $0x550] sm:$0xff] }
  0x71   :  { %v347_v17 = vld [vmem:[#allocation9 + $0x538] sm:$0xff] }
  0x72   :  { %v401_v21 = vcombine.high %v393_v18, %v393_v18  ;;  %v400_v23 = vrot.slane %v386_v19, %v392_v16  ;;  %v348_v16 = vld [vmem:[#allocation9 + $0x540] sm:$0xff]  ;;  %v345_v19 = vld [vmem:[#allocation9 + $0x528] sm:$0xff] }
  0x74   :  { %481 = vmatprep.mubr.f32.mxu0 %v401_v21  ;;  %v402_v25 = vcombine.high %v400_v23, %v400_v23  ;;  %v344_v21 = vld [vmem:[#allocation9 + $0x520] sm:$0xff] }
  0x75   :  { %482 = vmatmul.mubr.f32.vlgmr.msra.gmra.mxu0 %v393_v18  ;;  %v346_v18 = vld [vmem:[#allocation9 + $0x530] sm:$0xff] }
  0x76   :  { %552 = vmatprep.mubr.f32.mxu1 %v402_v25  ;;  %560 = vmatpush1.msra.mxu0 %v338_v24  ;;  %v342_v24 = vld [vmem:[#allocation9 + $0x510] sm:$0xff]  ;;  %v341_v25 = vld [vmem:[#allocation9 + $0x508] sm:$0xff] }
  0x77   :  { %553 = vmatmul.mubr.f32.vlgmr.msra.gmra.mxu1 %v400_v23  ;;  %561 = vmatprep.subr.mxu0 %v337_v26  ;;  %v343_v23 = vld [vmem:[#allocation9 + $0x518] sm:$0xff]  ;;  %v340_v26 = vld [vmem:[#allocation9 + $0x500] sm:$0xff] }
  0x78   :  { %562 = vmatpush1.msra.mxu0 %v336_v28  ;;  %623 = vmatprep.mubr.f32.mxu0 %v410_v27  ;;  %v663_v27 = vld [vmem:[%s1147_s5 + $0xf8] sm:$0xff] }
  0x79   :  { %563 = vmatprep.subr.mxu0 %v335_v29  ;;  %v647_v28 = vld [vmem:[%s1147_s5 + $0x78] sm:$0xff]  ;;  %v662_v29 = vld [vmem:[%s1147_s5 + $0xf0] sm:$0xff]  ;;  %775 = vmatprep.subr.mxu1 %v663_v27 }
  0x7a   :  { %564 = vmatpush1.msra.mxu0 %v334_v30  ;;  %v646_v30 = vld [vmem:[%s1147_s5 + $0x70] sm:$0xff]  ;;  %776 = vmatpush3.msra.mxu1 %v647_v28 }
  0x7b   :  { %565 = vmatprep.subr.mxu0 %v333_v31  ;;  %777 = vmatprep.subr.mxu1 %v662_v29  ;;  %v645_v31 = vld [vmem:[%s1147_s5 + $0x68] sm:$0xff] }
  0x7c   :  { %566 = vmatpush1.msra.mxu0 %v332_v32  ;;  %778 = vmatpush3.msra.mxu1 %v646_v30  ;;  %v660_v32 = vld [vmem:[%s1147_s5 + $0xe0] sm:$0xff] }
  0x7d   :  { %567 = vmatprep.subr.mxu0 %v331_v33  ;;  %v644_v33 = vld [vmem:[%s1147_s5 + $0x60] sm:$0xff] }
  0x7e   :  { %568 = vmatpush1.msra.mxu0 %v330_v34  ;;  %v659_v34 = vld [vmem:[%s1147_s5 + $0xd8] sm:$0xff] }
  0x7f   :  { %569 = vmatprep.subr.mxu0 %v329_v35  ;;  %v643_v35 = vld [vmem:[%s1147_s5 + $0x58] sm:$0xff] }
  0x80   :  { %570 = vmatpush1.msra.mxu0 %v328_v36  ;;  %v658_v36 = vld [vmem:[%s1147_s5 + $0xd0] sm:$0xff] }
  0x81   :  { %571 = vmatprep.subr.mxu0 %v327_v37  ;;  %v642_v37 = vld [vmem:[%s1147_s5 + $0x50] sm:$0xff] }
  0x82   :  { %572 = vmatpush1.msra.mxu0 %v326_v38  ;;  %v657_v38 = vld [vmem:[%s1147_s5 + $0xc8] sm:$0xff] }
  0x83   :  { %573 = vmatprep.subr.mxu0 %v325_v39  ;;  %v641_v39 = vld [vmem:[%s1147_s5 + $0x48] sm:$0xff] }
  0x84   :  { %574 = vmatpush1.msra.mxu0 %v324_v40  ;;  %v656_v40 = vld [vmem:[%s1147_s5 + $0xc0] sm:$0xff] }
  0x85   :  { %575 = vmatprep.subr.mxu0 %v323_v41  ;;  %v640_v41 = vld [vmem:[%s1147_s5 + $0x40] sm:$0xff] }
  0x86   :  { %576 = vmatpush1.msra.mxu0 %v322_v42  ;;  %v655_v42 = vld [vmem:[%s1147_s5 + $0xb8] sm:$0xff] }
  0x87   :  { %577 = vmatprep.subr.mxu0 %v321_v43  ;;  %v639_v43 = vld [vmem:[%s1147_s5 + $0x38] sm:$0xff] }
  0x88   :  { %578 = vmatpush1.msra.mxu0 %v320_v44  ;;  %v654_v44 = vld [vmem:[%s1147_s5 + $0xb0] sm:$0xff] }
  0x89   :  { %579 = vmatprep.subr.mxu0 %v319_v45  ;;  %v638_v45 = vld [vmem:[%s1147_s5 + $0x30] sm:$0xff] }
  0x8a   :  { %580 = vmatpush1.msra.mxu0 %v318_v46  ;;  %v653_v46 = vld [vmem:[%s1147_s5 + $0xa8] sm:$0xff] }
  0x8b   :  { %581 = vmatprep.subr.mxu0 %v317_v47  ;;  %v637_v47 = vld [vmem:[%s1147_s5 + $0x28] sm:$0xff] }
  0x8c   :  { %582 = vmatpush1.msra.mxu0 %v316_v48  ;;  %v652_v48 = vld [vmem:[%s1147_s5 + $0xa0] sm:$0xff] }
  0x8d   :  { %583 = vmatprep.subr.mxu0 %v315_v49  ;;  %v636_v49 = vld [vmem:[%s1147_s5 + $0x20] sm:$0xff] }
  0x8e   :  { %584 = vmatpush1.msra.mxu0 %v314_v50  ;;  %v651_v50 = vld [vmem:[%s1147_s5 + $0x98] sm:$0xff] }
  0x8f   :  { %585 = vmatprep.subr.mxu0 %v313_v51  ;;  %v635_v51 = vld [vmem:[%s1147_s5 + $0x18] sm:$0xff] }
  0x90   :  { %586 = vmatpush1.msra.mxu0 %v312_v52  ;;  %v650_v52 = vld [vmem:[%s1147_s5 + $0x90] sm:$0xff] }
  0x91   :  { %587 = vmatprep.subr.mxu0 %v311_v53  ;;  %v634_v53 = vld [vmem:[%s1147_s5 + $0x10] sm:$0xff] }
  0x92   :  { %588 = vmatpush1.msra.mxu0 %v310_v54  ;;  %v649_v54 = vld [vmem:[%s1147_s5 + $0x88] sm:$0xff] }
  0x93   :  { %589 = vmatprep.subr.mxu0 %v309_v55  ;;  %v633_v55 = vld [vmem:[%s1147_s5 + $0x8] sm:$0xff] }
  0x94   :  { %590 = vmatpush1.msra.mxu0 %v308_v56  ;;  %v648_v56 = vld [vmem:[%s1147_s5 + $0x80] sm:$0xff] }
  0x95   :  { %591 = vmatprep.subr.mxu0 %v371_v57  ;;  %v632_v57 = vld [vmem:[%s1147_s5] sm:$0xff] }
  0x96   :  { %592 = vmatpush2.msra.mxu0 %v370_v58  ;;  %v376_v58 = vsub.s32 0, %v1007_v22 }
  0x97   :  { %593 = vmatprep.subr.mxu0 %v369_v59  ;;  %v372_v59 = vld [vmem:[%s1146_s4] sm:$0x3] }
  0x98   :  { %594 = vmatpush2.msra.mxu0 %v368_v60  ;;  %v380_v60 = vsub.s32 1, %v1007_v22  ;;  %v774_v22 = vld [vmem:[#allocation3] ss:$0 sm:$0xff] }
  0x99   :  { %595 = vmatprep.subr.mxu0 %v367_v61 }
  0x9a   :  { %596 = vmatpush2.msra.mxu0 %v366_v62  ;;  %v377_v62 = vrot.slane %v372_v59, %v376_v58 }
  0x9b   :  { %597 = vmatprep.subr.mxu0 %v365_v63  ;;  %v381_v63 = vrot.slane %v372_v59, %v380_v60 }
  0x9c   :  { %598 = vmatpush2.msra.mxu0 %v364_v0 }
  0x9d   :  { %599 = vmatprep.subr.mxu0 %v363_v1 }
  0x9e   :  { %600 = vmatpush2.msra.mxu0 %v362_v2 }
  0x9f   :  { %601 = vmatprep.subr.mxu0 %v361_v3 }
  0xa0   :  { %602 = vmatpush2.msra.mxu0 %v360_v4 }
  0xa1   :  { %603 = vmatprep.subr.mxu0 %v359_v5 }
  0xa2   :  { %604 = vmatpush2.msra.mxu0 %v358_v6 }
  0xa3   :  { %605 = vmatprep.subr.mxu0 %v357_v7 }
  0xa4   :  { %606 = vmatpush2.msra.mxu0 %v356_v8 }
  0xa5   :  { %607 = vmatprep.subr.mxu0 %v355_v9 }
  0xa6   :  { %608 = vmatpush2.msra.mxu0 %v354_v10 }
  0xa7   :  { %609 = vmatprep.subr.mxu0 %v353_v11 }
  0xa8   :  { %610 = vmatpush2.msra.mxu0 %v352_v12 }
  0xa9   :  { %611 = vmatprep.subr.mxu0 %v351_v13 }
  0xaa   :  { %612 = vmatpush2.msra.mxu0 %v350_v14 }
  0xab   :  { %613 = vmatprep.subr.mxu0 %v349_v15 }
  0xac   :  { %614 = vmatpush2.msra.mxu0 %v348_v16 }
  0xad   :  { %615 = vmatprep.subr.mxu0 %v347_v17 }
  0xae   :  { %616 = vmatpush2.msra.mxu0 %v346_v18 }
  0xaf   :  { %617 = vmatprep.subr.mxu0 %v345_v19 }
  0xb0   :  { %618 = vmatpush2.msra.mxu0 %v344_v21 }
  0xb1   :  { %619 = vmatprep.subr.mxu0 %v343_v23 }
  0xb2   :  { %620 = vmatpush2.msra.mxu0 %v342_v24 }
  0xb3   :  { %621 = vmatprep.subr.mxu0 %v341_v25 }
  0xb4   :  { %622 = vmatpush2.msra.mxu0 %v340_v26 }
  0xb5   :  { %624 = vmatmul.mubr.f32.vlgmr.msra.gmra.mxu0 %v1033_v20  ;;  %v661_v20 = vld [vmem:[%s1147_s5 + $0xe8] sm:$0xff] }
  0xb6   :  { %779 = vmatprep.subr.mxu1 %v661_v20 }
  0xb7   :  { %780 = vmatpush3.msra.mxu1 %v645_v31 }
  0xb8   :  { %781 = vmatprep.subr.mxu1 %v660_v32 }
  0xb9   :  { %782 = vmatpush3.msra.mxu1 %v644_v33 }
  0xba   :  { %783 = vmatprep.subr.mxu1 %v659_v34 }
  0xbb   :  { %784 = vmatpush3.msra.mxu1 %v643_v35 }
  0xbc   :  { %785 = vmatprep.subr.mxu1 %v658_v36 }
  0xbd   :  { %786 = vmatpush3.msra.mxu1 %v642_v37 }
  0xbe   :  { %787 = vmatprep.subr.mxu1 %v657_v38 }
  0xbf   :  { %788 = vmatpush3.msra.mxu1 %v641_v39 }
  0xc0   :  { %789 = vmatprep.subr.mxu1 %v656_v40 }
  0xc1   :  { %790 = vmatpush3.msra.mxu1 %v640_v41 }
  0xc2   :  { %791 = vmatprep.subr.mxu1 %v655_v42 }
  0xc3   :  { %792 = vmatpush3.msra.mxu1 %v639_v43 }
  0xc4   :  { %793 = vmatprep.subr.mxu1 %v654_v44 }
  0xc5   :  { %794 = vmatpush3.msra.mxu1 %v638_v45 }
  0xc6   :  { %795 = vmatprep.subr.mxu1 %v653_v46 }
  0xc7   :  { %796 = vmatpush3.msra.mxu1 %v637_v47 }
  0xc8   :  { %797 = vmatprep.subr.mxu1 %v652_v48 }
  0xc9   :  { %798 = vmatpush3.msra.mxu1 %v636_v49 }
  0xca   :  { %799 = vmatprep.subr.mxu1 %v651_v50 }
  0xcb   :  { %800 = vmatpush3.msra.mxu1 %v635_v51 }
  0xcc   :  { %801 = vmatprep.subr.mxu1 %v650_v52 }
  0xcd   :  { %802 = vmatpush3.msra.mxu1 %v634_v53 }
  0xce   :  { %803 = vmatprep.subr.mxu1 %v649_v54 }
  0xcf   :  { %804 = vmatpush3.msra.mxu1 %v633_v55 }
  0xd0   :  { %805 = vmatprep.subr.mxu1 %v648_v56 }
  0xd1   :  { %806 = vmatpush3.msra.mxu1 %v632_v57 }
 0x135   :  { %v483_v61 = vpop.f32.mrf.mxu0 }
 0x136   :  { %v484_v2 = vadd.f32 %v483_v61, %v377_v62 }
 0x137   :  { %v485_v0 = vpop.f32.mrf.mxu0  ;;  %v554_v1 = vpop.f32.mrf.mxu1 }
 0x138   :  { %v486_v3 = vadd.f32 %v485_v0, %v381_v63  ;;  %v555_v5 = vadd.f32 %v554_v1, %v484_v2 }
 0x139   :  { %v556_v4 = vpop.f32.mrf.mxu1 }
 0x13a   :  { %v557_v7 = vadd.f32 %v556_v4, %v486_v3 }
 0x175   :  { %v625_v6 = vpop.f32.mrf.mxu0 }
 0x176   :  { %v626_v8 = vadd.f32 %v625_v6, %v555_v5 }
 0x177   :  { %v627_v9 = vpop.f32.mrf.mxu0 }
 0x178   :  { %v628_v10 = vadd.f32 %v627_v9, %v557_v7  ;;  %v630_v12 = vmax.f32 %v626_v8, 0.0 }
 0x17a   :  { %v631_v11 = vmax.f32 %v628_v10, 0.0 }
 0x17c   :  { %735 = vmatprep.mubr.f32.mxu1 %v631_v11 }
 0x17d   :  { %736 = vmatmul.mubr.f32.vlgmr.msra.gmra.mxu1 %v630_v12 }
 0x23d   :  { %v807_v13 = vpop.f32.mrf.mxu1 }
 0x23f   :  { %v808_v14 = vpop.f32.mrf.mxu1 }
 0x240   :  { %v809_v15 = vadd.f32 %v808_v14, %v807_v13 }
 0x242   :  { %v738_v16 = vadd.f32 %v809_v15, %v774_v22 }
 0x244   :  { %819 = vtanh.f32 %v738_v16 }
 0x251   :  { %v820_v17 = vpop.eup %819 }
 0x252   :  { %743 = vst.msk [vmem:[%s1149_s7] sm:$0x3] %vm742_vm6, %v820_v17 }
 0x253   :  { %748 = vsyncpa [#allocation5], 1 }
 0x254   :  { %749 = vsyncpa [#allocation6], 1 }
 0x255   :  { %750 = vsyncpa [#allocation8], 1 }

</bundles_post_ra>
